<compile_context>
chip_gen: v7x
topology: tpu7x:2x2x1
jax: 0.10.0
libtpu: 0.0.40
codegen_flags: <defaults>
</compile_context>

<pallas_src>
import functools

import jax
import jax.numpy as jnp
from jax import lax
from jax.experimental import pallas as pl
from jax.experimental.pallas import tpu as pltpu

_INV_SQRT2 = 0.7071067811865476
_EPS = 1e-5


def _gelu_exact(x):
    # PyTorch nn.GELU() default is the exact erf-based formulation.
    return 0.5 * x * (1.0 + lax.erf(x * _INV_SQRT2))


def _layer_norm(v, g, b):
    m = jnp.mean(v, axis=-1, keepdims=True)
    var = jnp.mean((v - m) ** 2, axis=-1, keepdims=True)
    return (v - m) * lax.rsqrt(var + _EPS) * g + b


# --------------------------------------------------------------------------------------
# Fused per-batch Pallas kernel
# --------------------------------------------------------------------------------------

def _local_adapter_kernel(xsh_ref, kv_ref, w1_ref, w2_ref, t1_ref, t2_ref,
                          gq1_ref, bq1_ref, gq2_ref, bq2_ref, gkv_ref, bkv_ref,
                          gmat_ref, wf_ref, o_ref, *, H, W, scale):
    tok = H * W
    Ch = w1_ref.shape[1]

    # ---- conv branches (eval-mode BN scale folded into the bf16 weights; shift here) ----
    # xsh_ref[0, dj] is the zero-padded image, shifted by dj along W and flattened over
    # ((H+2), W); tap (di, dj) of the 3x3 conv is the aligned row window [di*W, di*W+tok).
    acc2 = jnp.zeros((tok, Ch), jnp.float32)
    xl1 = None
    for dj in range(3):
        slab = xsh_ref[0, dj]                                   # ((H+2)*W, Cin) f32
        if dj == 1:
            # 1x1 conv input = centre pixels (di = 1 window of the dj = 1 slab)
            xc = slab[W:W + tok, :].astype(jnp.bfloat16)
            xl1 = _gelu_exact(
                jnp.dot(xc, w1_ref[...], preferred_element_type=jnp.float32)
                + t1_ref[...])
        for di in range(3):
            patch = slab[di * W:di * W + tok, :].astype(jnp.bfloat16)
            acc2 = acc2 + jnp.dot(patch, w2_ref[di * 3 + dj],
                                  preferred_element_type=jnp.float32)
    xl2 = _gelu_exact(acc2 + t2_ref[...])

    # ---- parameter-free cross attention; LN(kv) computed once for both streams ----
    k = _layer_norm(kv_ref[0], gkv_ref[...], bkv_ref[...])      # (T, Ch), k == v

    def attend(xq, g, b):
        q = _layer_norm(xq, g, b)
        s = lax.dot_general(q, k, (((1,), (1,)), ((), ())),
                            preferred_element_type=jnp.float32) * scale   # (tok, T)
        s = s - jnp.max(s, axis=-1, keepdims=True)
        p = jnp.exp(s)
        p = p * pl.reciprocal(jnp.sum(p, axis=-1, keepdims=True), approx=True)
        return xq + jnp.dot(p, k, preferred_element_type=jnp.float32)

    xl1 = attend(xl1, gq1_ref[...], bq1_ref[...])
    xl2 = attend(xl2, gq2_ref[...], bq2_ref[...])

    # ---- spatial gate: channel mean / max over the concatenation [xl1, xl2] ----
    avg = (jnp.sum(xl1, axis=-1, keepdims=True) +
           jnp.sum(xl2, axis=-1, keepdims=True)) * (0.5 / Ch)   # (tok, 1)
    mx = jnp.maximum(jnp.max(xl1, axis=-1, keepdims=True),
                     jnp.max(xl2, axis=-1, keepdims=True))      # (tok, 1)

    # 3x3 gating conv expressed as precomputed (tok, tok) shift-weight matmuls.
    y0 = jax.nn.sigmoid(jnp.dot(gmat_ref[0], avg, preferred_element_type=jnp.float32) +
                        jnp.dot(gmat_ref[1], mx, preferred_element_type=jnp.float32))
    y1 = jax.nn.sigmoid(jnp.dot(gmat_ref[2], avg, preferred_element_type=jnp.float32) +
                        jnp.dot(gmat_ref[3], mx, preferred_element_type=jnp.float32))

    gated = (xl1 * y0 + xl2 * y1).astype(jnp.bfloat16)

    # ---- final 1x1 projection (output channels zero-padded to a lane-dense 128k) ----
    o_ref[0] = jnp.dot(gated, wf_ref[...], preferred_element_type=jnp.float32)


def fused_local_adapter(xsh, kv, w1, w2, t1, t2, gq1, bq1, gq2, bq2, gkv, bkv,
                        gmat, wf, *, H, W, scale):
    B, _, HpW, Cin = xsh.shape
    T = kv.shape[1]
    Ch = w1.shape[1]
    Np = wf.shape[1]
    tok = H * W
    vec = pl.BlockSpec((1, Ch), lambda b: (0, 0))
    kern = functools.partial(_local_adapter_kernel, H=H, W=W, scale=scale)
    return pl.pallas_call(
        kern,
        out_shape=jax.ShapeDtypeStruct((B, tok, Np), jnp.float32),
        grid_spec=pltpu.PrefetchScalarGridSpec(
            num_scalar_prefetch=0,
            grid=(B,),
            in_specs=[
                pl.BlockSpec((1, 3, HpW, Cin), lambda b: (b, 0, 0, 0)),   # shifted slabs
                pl.BlockSpec((1, T, Ch), lambda b: (b, 0, 0)),            # text kv
                pl.BlockSpec((Cin, Ch), lambda b: (0, 0)),                # w1 (bf16)
                pl.BlockSpec((9, Cin, Ch), lambda b: (0, 0, 0)),          # w2 taps (bf16)
                vec, vec,                                                 # t1, t2
                vec, vec, vec, vec, vec, vec,                             # LN params
                pl.BlockSpec((4, tok, tok), lambda b: (0, 0, 0)),         # gate matrices
                pl.BlockSpec((Ch, Np), lambda b: (0, 0)),                 # wf (bf16)
            ],
            out_specs=pl.BlockSpec((1, tok, Np), lambda b: (b, 0, 0)),
        ),
        compiler_params=pltpu.CompilerParams(dimension_semantics=("parallel",)),
    )(xsh, kv, w1, w2, t1, t2, gq1, bq1, gq2, bq2, gkv, bkv, gmat, wf)


# --------------------------------------------------------------------------------------
# Plain-JAX glue: layout / padding / weight-side preprocessing (BN folding, gate matrices)
# --------------------------------------------------------------------------------------

def _gate_shift_matrices(wg, H, W):
    """Fold the 3x3 (2->2) gating conv into four (tok, tok) matrices so the spatial conv
    becomes y_c = K[c,0] @ avg + K[c,1] @ max inside the kernel (zero padding)."""
    tok = H * W
    t = jnp.arange(tok)
    h, w = t // W, t % W
    mats = []
    for c in range(2):
        for ci in range(2):
            K = jnp.zeros((tok, tok), jnp.float32)
            for kh in range(3):
                for kw in range(3):
                    h2, w2 = h + kh - 1, w + kw - 1
                    valid = (h2 >= 0) & (h2 < H) & (w2 >= 0) & (w2 < W)
                    src = jnp.where(valid, h2 * W + w2, 0)
                    sel = ((jnp.arange(tok)[None, :] == src[:, None]) &
                           valid[:, None]).astype(jnp.float32)
                    K = K + wg[c, ci, kh, kw] * sel
            mats.append(K)
    return jnp.stack(mats, axis=0)                                # (4, tok, tok)


def local_adapter_forward(x, text_fea, p):
    x_cls, xs = x[:1], x[1:]
    tok, B, in_dim = xs.shape
    H = int(round(float(tok) ** 0.5))
    W = H
    Ch = p["conv1_w"].shape[0]                                    # hidden_dim == text_dim
    out_dim = p["convf_w"].shape[0]

    # pixel-major, channel-last image; 3 W-shifted, zero-padded slabs for the 3x3 taps
    x_img = jnp.transpose(xs, (1, 0, 2)).reshape(B, H, W, in_dim)
    xpad = jnp.pad(x_img, ((0, 0), (1, 1), (1, 1), (0, 0)))
    xsh = jnp.stack([xpad[:, :, dj:dj + W, :] for dj in range(3)], axis=1)
    xsh = xsh.reshape(B, 3, (H + 2) * W, in_dim)

    # fold eval-mode BatchNorm into the conv weights (bf16) + per-channel shift (f32)
    s1 = p["bn1_g"] * lax.rsqrt(p["bn1_rv"] + _EPS)
    t1 = (p["bn1_b"] - p["bn1_rm"] * s1)[None, :]
    s2 = p["bn2_g"] * lax.rsqrt(p["bn2_rv"] + _EPS)
    t2 = (p["bn2_b"] - p["bn2_rm"] * s2)[None, :]
    w1 = (p["conv1_w"].reshape(Ch, in_dim).T * s1[None, :]).astype(jnp.bfloat16)
    w2 = (jnp.transpose(p["conv2_w"], (2, 3, 1, 0)) * s2[None, None, None, :])
    w2 = w2.reshape(9, in_dim, Ch).astype(jnp.bfloat16)           # tap = kh*3 + kw

    # gate conv folded into shift-weight matrices (weight-side preprocessing)
    gmat = _gate_shift_matrices(p["convg_w"], H, W)

    # final 1x1 conv, output channels padded to a lane-dense multiple of 128
    Np = ((out_dim + 127) // 128) * 128
    wf = jnp.zeros((Ch, Np), jnp.float32)
    wf = wf.at[:, :out_dim].set(p["convf_w"].reshape(out_dim, Ch).T)
    wf = wf.astype(jnp.bfloat16)

    kv = jnp.transpose(text_fea, (1, 0, 2))                       # (B, T, Ch)
    scale = float(Ch) ** (-0.5)

    out = fused_local_adapter(
        xsh, kv, w1, w2, t1, t2,
        p["ln_q1_g"][None, :], p["ln_q1_b"][None, :],
        p["ln_q2_g"][None, :], p["ln_q2_b"][None, :],
        p["ln_kv_g"][None, :], p["ln_kv_b"][None, :],
        gmat, wf, H=H, W=W, scale=scale)                          # (B, tok, Np)

    out = out[..., :out_dim]
    out = jnp.transpose(out, (1, 0, 2))                           # (tok, B, out_dim)
    return jnp.concatenate([x_cls, out], axis=0)


# --------------------------------------------------------------------------------------
# Pure-JAX reference (mirrors the PyTorch forward with NCHW convs) for validation
# --------------------------------------------------------------------------------------

def reference_forward(x, text_fea, p):
    hi = lax.Precision.HIGHEST

    def conv2d(v, w, padding):
        return lax.conv_general_dilated(v, w, (1, 1), [(padding, padding)] * 2,
                                        dimension_numbers=("NCHW", "OIHW", "NCHW"),
                                        precision=hi)

    def bn(v, g, b, rm, rv):
        return ((v - rm[None, :, None, None]) / jnp.sqrt(rv[None, :, None, None] + _EPS)
                * g[None, :, None, None] + b[None, :, None, None])

    def gelu(v):
        return 0.5 * v * (1.0 + lax.erf(v * _INV_SQRT2))

    def ln(v, g, b):
        m = v.mean(-1, keepdims=True)
        var = ((v - m) ** 2).mean(-1, keepdims=True)
        return (v - m) / jnp.sqrt(var + _EPS) * g + b

    x_cls, xs = x[:1], x[1:]
    tok, B, dim = xs.shape
    H = int(round(tok ** 0.5))
    Ch = p["conv1_w"].shape[0]
    x_loc = jnp.transpose(xs, (1, 2, 0)).reshape(B, dim, H, H)
    xl1 = gelu(bn(conv2d(x_loc, p["conv1_w"], 0), p["bn1_g"], p["bn1_b"], p["bn1_rm"], p["bn1_rv"]))
    xl2 = gelu(bn(conv2d(x_loc, p["conv2_w"], 1), p["bn2_g"], p["bn2_b"], p["bn2_rm"], p["bn2_rv"]))
    xl1 = xl1.reshape(B, Ch, tok)
    xl2 = xl2.reshape(B, Ch, tok)

    kv = ln(jnp.transpose(text_fea, (1, 0, 2)), p["ln_kv_g"], p["ln_kv_b"])
    scale = float(Ch) ** (-0.5)

    def cattn(q):
        attn = jax.nn.softmax(jnp.einsum("btd,bsd->bts", q, kv, precision=hi) * scale, axis=-1)
        return jnp.einsum("bts,bsd->btd", attn, kv, precision=hi)

    xl1 = xl1 + jnp.transpose(cattn(ln(jnp.transpose(xl1, (0, 2, 1)), p["ln_q1_g"], p["ln_q1_b"])), (0, 2, 1))
    xl2 = xl2 + jnp.transpose(cattn(ln(jnp.transpose(xl2, (0, 2, 1)), p["ln_q2_g"], p["ln_q2_b"])), (0, 2, 1))
    xl1 = xl1.reshape(B, Ch, H, H)
    xl2 = xl2.reshape(B, Ch, H, H)

    x_all = jnp.concatenate([xl1, xl2], axis=1)
    agg = jnp.concatenate([x_all.mean(1, keepdims=True), x_all.max(1, keepdims=True)], axis=1)
    y = jax.nn.sigmoid(conv2d(agg, p["convg_w"], 1))
    xx = xl1 * y[:, 0:1] + xl2 * y[:, 1:2]
    xx = conv2d(xx, p["convf_w"], 0)
    xx = jnp.transpose(xx.reshape(B, -1, tok), (2, 0, 1))
    return jnp.concatenate([x_cls, xx], axis=0)


# --------------------------------------------------------------------------------------
# Deterministic parameter init (PyTorch layouts: OIHW conv weights, per-channel BN/LN)
# --------------------------------------------------------------------------------------

def init_params(key, in_dim, out_dim, text_dim):
    ks = jax.random.split(key, 18)

    def n(k, shape, s=0.05):
        return s * jax.random.normal(k, shape, jnp.float32)

    return dict(
        conv1_w=n(ks[0], (text_dim, in_dim, 1, 1)),
        conv2_w=n(ks[1], (text_dim, in_dim, 3, 3)),
        convg_w=n(ks[2], (2, 2, 3, 3), 0.3),
        convf_w=n(ks[3], (out_dim, text_dim, 1, 1)),
        bn1_g=1.0 + n(ks[4], (text_dim,), 0.1),
        bn1_b=n(ks[5], (text_dim,), 0.1),
        bn1_rm=n(ks[6], (text_dim,), 0.1),
        bn1_rv=1.0 + jnp.abs(n(ks[7], (text_dim,), 0.2)),
        bn2_g=1.0 + n(ks[8], (text_dim,), 0.1),
        bn2_b=n(ks[9], (text_dim,), 0.1),
        bn2_rm=n(ks[10], (text_dim,), 0.1),
        bn2_rv=1.0 + jnp.abs(n(ks[11], (text_dim,), 0.2)),
        ln_q1_g=1.0 + n(ks[12], (text_dim,), 0.1),
        ln_q1_b=n(ks[13], (text_dim,), 0.1),
        ln_q2_g=1.0 + n(ks[14], (text_dim,), 0.1),
        ln_q2_b=n(ks[15], (text_dim,), 0.1),
        ln_kv_g=1.0 + n(ks[16], (text_dim,), 0.1),
        ln_kv_b=n(ks[17], (text_dim,), 0.1),
    )


if __name__ == "__main__":
    # Small shapes consistent with the module: in_dim == out_dim (cls token is concatenated
    # back), hidden_dim == text_dim, tok = H*H patch tokens.
    in_dim = out_dim = 128
    text_dim = 128
    H = 8
    tok = H * H
    B = 2
    T = 8                                   # text sequence length

    root = jax.random.PRNGKey(0)
    k_param, k_x, k_t = jax.random.split(root, 3)
    params = init_params(k_param, in_dim, out_dim, text_dim)
    x = jax.random.normal(k_x, (tok + 1, B, in_dim), jnp.float32)
    text_fea = jax.random.normal(k_t, (T, B, text_dim), jnp.float32)

    out = jax.jit(local_adapter_forward)(x, text_fea, params)
    out = jax.block_until_ready(out)
    assert out.shape == (tok + 1, B, out_dim), out.shape

    ref = reference_forward(x, text_fea, params)
    max_err = float(jnp.max(jnp.abs(out - ref)))
    # Tolerance is looser than the all-f32 variant because the conv / projection matmuls
    # take bf16 inputs (f32 accumulation) per the performance review.
    assert max_err < 5e-2, f"max abs error {max_err}"
    print("KERNEL_OK")
</pallas_src>

<mosaic_0001>
module attributes {stable_mosaic.version = 11 : i64} {
  func.func @_local_adapter_kernel(%arg0: i32, %arg1: memref<1x3x80x128xf32, #tpu.memory_space<vmem>>, %arg2: memref<1x8x128xf32, #tpu.memory_space<vmem>>, %arg3: memref<128x128xbf16, #tpu.memory_space<vmem>>, %arg4: memref<9x128x128xbf16, #tpu.memory_space<vmem>>, %arg5: memref<1x128xf32, #tpu.memory_space<vmem>>, %arg6: memref<1x128xf32, #tpu.memory_space<vmem>>, %arg7: memref<1x128xf32, #tpu.memory_space<vmem>>, %arg8: memref<1x128xf32, #tpu.memory_space<vmem>>, %arg9: memref<1x128xf32, #tpu.memory_space<vmem>>, %arg10: memref<1x128xf32, #tpu.memory_space<vmem>>, %arg11: memref<1x128xf32, #tpu.memory_space<vmem>>, %arg12: memref<1x128xf32, #tpu.memory_space<vmem>>, %arg13: memref<4x64x64xf32, #tpu.memory_space<vmem>>, %arg14: memref<128x128xbf16, #tpu.memory_space<vmem>>, %arg15: memref<1x64x128xf32, #tpu.memory_space<vmem>>) attributes {dimension_semantics = [#tpu.dimension_semantics<parallel>], iteration_bounds = array<i64: 2>, scalar_prefetch = 0 : i64, scratch_operands = 0 : i64, tpu.core_type = #tpu.core_type<tc>, window_params = [{transform_indices = @transform_0, window_bounds = array<i64: 1, 3, 80, 128>}, {transform_indices = @transform_1, window_bounds = array<i64: 1, 8, 128>}, {pipeline_mode = #tpu.pipeline_mode<synchronous>, transform_indices = @transform_2, window_bounds = array<i64: 128, 128>}, {pipeline_mode = #tpu.pipeline_mode<synchronous>, transform_indices = @transform_3, window_bounds = array<i64: 9, 128, 128>}, {pipeline_mode = #tpu.pipeline_mode<synchronous>, transform_indices = @transform_4, window_bounds = array<i64: 1, 128>}, {pipeline_mode = #tpu.pipeline_mode<synchronous>, transform_indices = @transform_5, window_bounds = array<i64: 1, 128>}, {pipeline_mode = #tpu.pipeline_mode<synchronous>, transform_indices = @transform_6, window_bounds = array<i64: 1, 128>}, {pipeline_mode = #tpu.pipeline_mode<synchronous>, transform_indices = @transform_7, window_bounds = array<i64: 1, 128>}, {pipeline_mode = #tpu.pipeline_mode<synchronous>, transform_indices = @transform_8, window_bounds = array<i64: 1, 128>}, {pipeline_mode = #tpu.pipeline_mode<synchronous>, transform_indices = @transform_9, window_bounds = array<i64: 1, 128>}, {pipeline_mode = #tpu.pipeline_mode<synchronous>, transform_indices = @transform_10, window_bounds = array<i64: 1, 128>}, {pipeline_mode = #tpu.pipeline_mode<synchronous>, transform_indices = @transform_11, window_bounds = array<i64: 1, 128>}, {pipeline_mode = #tpu.pipeline_mode<synchronous>, transform_indices = @transform_12, window_bounds = array<i64: 4, 64, 64>}, {pipeline_mode = #tpu.pipeline_mode<synchronous>, transform_indices = @transform_13, window_bounds = array<i64: 128, 128>}, {transform_indices = @transform_14, window_bounds = array<i64: 1, 64, 128>}]} {
    %cst = arith.constant 0.000000e+00 : f32
    %0 = vector.broadcast %cst : f32 to vector<64x128xf32>
    %c0 = arith.constant 0 : index
    %c0_0 = arith.constant 0 : index
    %c0_1 = arith.constant 0 : index
    %c0_2 = arith.constant 0 : index
    %1 = vector.load %arg1[%c0, %c0_0, %c0_1, %c0_2] : memref<1x3x80x128xf32, #tpu.memory_space<vmem>>, vector<1x1x80x128xf32>
    %2 = vector.shape_cast %1 : vector<1x1x80x128xf32> to vector<80x128xf32>
    %3 = vector.extract_strided_slice %2 {offsets = [0, 0], sizes = [64, 128], strides = [1, 1]} : vector<80x128xf32> to vector<64x128xf32>
    %4 = arith.truncf %3 : vector<64x128xf32> to vector<64x128xbf16>
    %c0_3 = arith.constant 0 : index
    %c0_4 = arith.constant 0 : index
    %c0_5 = arith.constant 0 : index
    %5 = vector.load %arg4[%c0_3, %c0_4, %c0_5] : memref<9x128x128xbf16, #tpu.memory_space<vmem>>, vector<1x128x128xbf16>
    %6 = vector.shape_cast %5 : vector<1x128x128xbf16> to vector<128x128xbf16>
    %cst_6 = arith.constant dense<0.000000e+00> : vector<64x128xf32>
    %7 = tpu.matmul %4, %6, %cst_6 {dimension_numbers = #tpu.dot_dimension_numbers<[1], [0], [0], [1], [0, 0, 1, 1], [], []>} : vector<64x128xbf16>, vector<128x128xbf16>, vector<64x128xf32> -> vector<64x128xf32>
    %8 = arith.addf %0, %7 : vector<64x128xf32>
    %9 = vector.extract_strided_slice %2 {offsets = [8, 0], sizes = [64, 128], strides = [1, 1]} : vector<80x128xf32> to vector<64x128xf32>
    %10 = arith.truncf %9 : vector<64x128xf32> to vector<64x128xbf16>
    %c3 = arith.constant 3 : index
    %c0_7 = arith.constant 0 : index
    %c0_8 = arith.constant 0 : index
    %11 = vector.load %arg4[%c3, %c0_7, %c0_8] : memref<9x128x128xbf16, #tpu.memory_space<vmem>>, vector<1x128x128xbf16>
    %12 = vector.shape_cast %11 : vector<1x128x128xbf16> to vector<128x128xbf16>
    %cst_9 = arith.constant dense<0.000000e+00> : vector<64x128xf32>
    %13 = tpu.matmul %10, %12, %cst_9 {dimension_numbers = #tpu.dot_dimension_numbers<[1], [0], [0], [1], [0, 0, 1, 1], [], []>} : vector<64x128xbf16>, vector<128x128xbf16>, vector<64x128xf32> -> vector<64x128xf32>
    %14 = arith.addf %8, %13 : vector<64x128xf32>
    %15 = vector.extract_strided_slice %2 {offsets = [16, 0], sizes = [64, 128], strides = [1, 1]} : vector<80x128xf32> to vector<64x128xf32>
    %16 = arith.truncf %15 : vector<64x128xf32> to vector<64x128xbf16>
    %c6 = arith.constant 6 : index
    %c0_10 = arith.constant 0 : index
    %c0_11 = arith.constant 0 : index
    %17 = vector.load %arg4[%c6, %c0_10, %c0_11] : memref<9x128x128xbf16, #tpu.memory_space<vmem>>, vector<1x128x128xbf16>
    %18 = vector.shape_cast %17 : vector<1x128x128xbf16> to vector<128x128xbf16>
    %cst_12 = arith.constant dense<0.000000e+00> : vector<64x128xf32>
    %19 = tpu.matmul %16, %18, %cst_12 {dimension_numbers = #tpu.dot_dimension_numbers<[1], [0], [0], [1], [0, 0, 1, 1], [], []>} : vector<64x128xbf16>, vector<128x128xbf16>, vector<64x128xf32> -> vector<64x128xf32>
    %20 = arith.addf %14, %19 : vector<64x128xf32>
    %c0_13 = arith.constant 0 : index
    %c1 = arith.constant 1 : index
    %c0_14 = arith.constant 0 : index
    %c0_15 = arith.constant 0 : index
    %21 = vector.load %arg1[%c0_13, %c1, %c0_14, %c0_15] : memref<1x3x80x128xf32, #tpu.memory_space<vmem>>, vector<1x1x80x128xf32>
    %22 = vector.shape_cast %21 : vector<1x1x80x128xf32> to vector<80x128xf32>
    %23 = vector.extract_strided_slice %22 {offsets = [8, 0], sizes = [64, 128], strides = [1, 1]} : vector<80x128xf32> to vector<64x128xf32>
    %24 = arith.truncf %23 : vector<64x128xf32> to vector<64x128xbf16>
    %c0_16 = arith.constant 0 : index
    %c0_17 = arith.constant 0 : index
    %25 = vector.load %arg3[%c0_16, %c0_17] : memref<128x128xbf16, #tpu.memory_space<vmem>>, vector<128x128xbf16>
    %cst_18 = arith.constant dense<0.000000e+00> : vector<64x128xf32>
    %26 = tpu.matmul %24, %25, %cst_18 {dimension_numbers = #tpu.dot_dimension_numbers<[1], [0], [0], [1], [0, 0, 1, 1], [], []>} : vector<64x128xbf16>, vector<128x128xbf16>, vector<64x128xf32> -> vector<64x128xf32>
    %c0_19 = arith.constant 0 : index
    %c0_20 = arith.constant 0 : index
    %27 = vector.load %arg5[%c0_19, %c0_20] : memref<1x128xf32, #tpu.memory_space<vmem>>, vector<1x128xf32>
    %28 = vector.broadcast %27 : vector<1x128xf32> to vector<64x128xf32>
    %29 = arith.addf %26, %28 : vector<64x128xf32>
    %cst_21 = arith.constant 5.000000e-01 : f32
    %30 = vector.broadcast %cst_21 : f32 to vector<64x128xf32>
    %31 = arith.mulf %30, %29 : vector<64x128xf32>
    %cst_22 = arith.constant 0.707106769 : f32
    %32 = vector.broadcast %cst_22 : f32 to vector<64x128xf32>
    %33 = arith.mulf %29, %32 : vector<64x128xf32>
    %34 = math.erf %33 : vector<64x128xf32>
    %cst_23 = arith.constant 1.000000e+00 : f32
    %35 = vector.broadcast %cst_23 : f32 to vector<64x128xf32>
    %36 = arith.addf %35, %34 : vector<64x128xf32>
    %37 = arith.mulf %31, %36 : vector<64x128xf32>
    %38 = vector.extract_strided_slice %22 {offsets = [0, 0], sizes = [64, 128], strides = [1, 1]} : vector<80x128xf32> to vector<64x128xf32>
    %39 = arith.truncf %38 : vector<64x128xf32> to vector<64x128xbf16>
    %c1_24 = arith.constant 1 : index
    %c0_25 = arith.constant 0 : index
    %c0_26 = arith.constant 0 : index
    %40 = vector.load %arg4[%c1_24, %c0_25, %c0_26] : memref<9x128x128xbf16, #tpu.memory_space<vmem>>, vector<1x128x128xbf16>
    %41 = vector.shape_cast %40 : vector<1x128x128xbf16> to vector<128x128xbf16>
    %cst_27 = arith.constant dense<0.000000e+00> : vector<64x128xf32>
    %42 = tpu.matmul %39, %41, %cst_27 {dimension_numbers = #tpu.dot_dimension_numbers<[1], [0], [0], [1], [0, 0, 1, 1], [], []>} : vector<64x128xbf16>, vector<128x128xbf16>, vector<64x128xf32> -> vector<64x128xf32>
    %43 = arith.addf %20, %42 : vector<64x128xf32>
    %44 = vector.extract_strided_slice %22 {offsets = [8, 0], sizes = [64, 128], strides = [1, 1]} : vector<80x128xf32> to vector<64x128xf32>
    %45 = arith.truncf %44 : vector<64x128xf32> to vector<64x128xbf16>
    %c4 = arith.constant 4 : index
    %c0_28 = arith.constant 0 : index
    %c0_29 = arith.constant 0 : index
    %46 = vector.load %arg4[%c4, %c0_28, %c0_29] : memref<9x128x128xbf16, #tpu.memory_space<vmem>>, vector<1x128x128xbf16>
    %47 = vector.shape_cast %46 : vector<1x128x128xbf16> to vector<128x128xbf16>
    %cst_30 = arith.constant dense<0.000000e+00> : vector<64x128xf32>
    %48 = tpu.matmul %45, %47, %cst_30 {dimension_numbers = #tpu.dot_dimension_numbers<[1], [0], [0], [1], [0, 0, 1, 1], [], []>} : vector<64x128xbf16>, vector<128x128xbf16>, vector<64x128xf32> -> vector<64x128xf32>
    %49 = arith.addf %43, %48 : vector<64x128xf32>
    %50 = vector.extract_strided_slice %22 {offsets = [16, 0], sizes = [64, 128], strides = [1, 1]} : vector<80x128xf32> to vector<64x128xf32>
    %51 = arith.truncf %50 : vector<64x128xf32> to vector<64x128xbf16>
    %c7 = arith.constant 7 : index
    %c0_31 = arith.constant 0 : index
    %c0_32 = arith.constant 0 : index
    %52 = vector.load %arg4[%c7, %c0_31, %c0_32] : memref<9x128x128xbf16, #tpu.memory_space<vmem>>, vector<1x128x128xbf16>
    %53 = vector.shape_cast %52 : vector<1x128x128xbf16> to vector<128x128xbf16>
    %cst_33 = arith.constant dense<0.000000e+00> : vector<64x128xf32>
    %54 = tpu.matmul %51, %53, %cst_33 {dimension_numbers = #tpu.dot_dimension_numbers<[1], [0], [0], [1], [0, 0, 1, 1], [], []>} : vector<64x128xbf16>, vector<128x128xbf16>, vector<64x128xf32> -> vector<64x128xf32>
    %55 = arith.addf %49, %54 : vector<64x128xf32>
    %c0_34 = arith.constant 0 : index
    %c2 = arith.constant 2 : index
    %c0_35 = arith.constant 0 : index
    %c0_36 = arith.constant 0 : index
    %56 = vector.load %arg1[%c0_34, %c2, %c0_35, %c0_36] : memref<1x3x80x128xf32, #tpu.memory_space<vmem>>, vector<1x1x80x128xf32>
    %57 = vector.shape_cast %56 : vector<1x1x80x128xf32> to vector<80x128xf32>
    %58 = vector.extract_strided_slice %57 {offsets = [0, 0], sizes = [64, 128], strides = [1, 1]} : vector<80x128xf32> to vector<64x128xf32>
    %59 = arith.truncf %58 : vector<64x128xf32> to vector<64x128xbf16>
    %c2_37 = arith.constant 2 : index
    %c0_38 = arith.constant 0 : index
    %c0_39 = arith.constant 0 : index
    %60 = vector.load %arg4[%c2_37, %c0_38, %c0_39] : memref<9x128x128xbf16, #tpu.memory_space<vmem>>, vector<1x128x128xbf16>
    %61 = vector.shape_cast %60 : vector<1x128x128xbf16> to vector<128x128xbf16>
    %cst_40 = arith.constant dense<0.000000e+00> : vector<64x128xf32>
    %62 = tpu.matmul %59, %61, %cst_40 {dimension_numbers = #tpu.dot_dimension_numbers<[1], [0], [0], [1], [0, 0, 1, 1], [], []>} : vector<64x128xbf16>, vector<128x128xbf16>, vector<64x128xf32> -> vector<64x128xf32>
    %63 = arith.addf %55, %62 : vector<64x128xf32>
    %64 = vector.extract_strided_slice %57 {offsets = [8, 0], sizes = [64, 128], strides = [1, 1]} : vector<80x128xf32> to vector<64x128xf32>
    %65 = arith.truncf %64 : vector<64x128xf32> to vector<64x128xbf16>
    %c5 = arith.constant 5 : index
    %c0_41 = arith.constant 0 : index
    %c0_42 = arith.constant 0 : index
    %66 = vector.load %arg4[%c5, %c0_41, %c0_42] : memref<9x128x128xbf16, #tpu.memory_space<vmem>>, vector<1x128x128xbf16>
    %67 = vector.shape_cast %66 : vector<1x128x128xbf16> to vector<128x128xbf16>
    %cst_43 = arith.constant dense<0.000000e+00> : vector<64x128xf32>
    %68 = tpu.matmul %65, %67, %cst_43 {dimension_numbers = #tpu.dot_dimension_numbers<[1], [0], [0], [1], [0, 0, 1, 1], [], []>} : vector<64x128xbf16>, vector<128x128xbf16>, vector<64x128xf32> -> vector<64x128xf32>
    %69 = arith.addf %63, %68 : vector<64x128xf32>
    %70 = vector.extract_strided_slice %57 {offsets = [16, 0], sizes = [64, 128], strides = [1, 1]} : vector<80x128xf32> to vector<64x128xf32>
    %71 = arith.truncf %70 : vector<64x128xf32> to vector<64x128xbf16>
    %c8 = arith.constant 8 : index
    %c0_44 = arith.constant 0 : index
    %c0_45 = arith.constant 0 : index
    %72 = vector.load %arg4[%c8, %c0_44, %c0_45] : memref<9x128x128xbf16, #tpu.memory_space<vmem>>, vector<1x128x128xbf16>
    %73 = vector.shape_cast %72 : vector<1x128x128xbf16> to vector<128x128xbf16>
    %cst_46 = arith.constant dense<0.000000e+00> : vector<64x128xf32>
    %74 = tpu.matmul %71, %73, %cst_46 {dimension_numbers = #tpu.dot_dimension_numbers<[1], [0], [0], [1], [0, 0, 1, 1], [], []>} : vector<64x128xbf16>, vector<128x128xbf16>, vector<64x128xf32> -> vector<64x128xf32>
    %75 = arith.addf %69, %74 : vector<64x128xf32>
    %c0_47 = arith.constant 0 : index
    %c0_48 = arith.constant 0 : index
    %76 = vector.load %arg6[%c0_47, %c0_48] : memref<1x128xf32, #tpu.memory_space<vmem>>, vector<1x128xf32>
    %77 = vector.broadcast %76 : vector<1x128xf32> to vector<64x128xf32>
    %78 = arith.addf %75, %77 : vector<64x128xf32>
    %cst_49 = arith.constant 5.000000e-01 : f32
    %79 = vector.broadcast %cst_49 : f32 to vector<64x128xf32>
    %80 = arith.mulf %79, %78 : vector<64x128xf32>
    %cst_50 = arith.constant 0.707106769 : f32
    %81 = vector.broadcast %cst_50 : f32 to vector<64x128xf32>
    %82 = arith.mulf %78, %81 : vector<64x128xf32>
    %83 = math.erf %82 : vector<64x128xf32>
    %cst_51 = arith.constant 1.000000e+00 : f32
    %84 = vector.broadcast %cst_51 : f32 to vector<64x128xf32>
    %85 = arith.addf %84, %83 : vector<64x128xf32>
    %86 = arith.mulf %80, %85 : vector<64x128xf32>
    %c0_52 = arith.constant 0 : index
    %c0_53 = arith.constant 0 : index
    %c0_54 = arith.constant 0 : index
    %87 = vector.load %arg2[%c0_52, %c0_53, %c0_54] : memref<1x8x128xf32, #tpu.memory_space<vmem>>, vector<1x8x128xf32>
    %88 = vector.shape_cast %87 : vector<1x8x128xf32> to vector<8x128xf32>
    %c0_55 = arith.constant 0 : index
    %c0_56 = arith.constant 0 : index
    %89 = vector.load %arg11[%c0_55, %c0_56] : memref<1x128xf32, #tpu.memory_space<vmem>>, vector<1x128xf32>
    %c0_57 = arith.constant 0 : index
    %c0_58 = arith.constant 0 : index
    %90 = vector.load %arg12[%c0_57, %c0_58] : memref<1x128xf32, #tpu.memory_space<vmem>>, vector<1x128xf32>
    %cst_59 = arith.constant dense<0.000000e+00> : vector<8xf32>
    %91 = vector.multi_reduction <add>, %88, %cst_59 [1] : vector<8x128xf32> to vector<8xf32>
    %92 = vector.shape_cast %91 : vector<8xf32> to vector<8x1xf32>
    %cst_60 = arith.constant 1.280000e+02 : f32
    %93 = vector.broadcast %cst_60 : f32 to vector<8x1xf32>
    %94 = arith.divf %92, %93 : vector<8x1xf32>
    %95 = vector.broadcast %94 : vector<8x1xf32> to vector<8x128xf32>
    %96 = arith.subf %88, %95 : vector<8x128xf32>
    %97 = arith.mulf %96, %96 : vector<8x128xf32>
    %cst_61 = arith.constant dense<0.000000e+00> : vector<8xf32>
    %98 = vector.multi_reduction <add>, %97, %cst_61 [1] : vector<8x128xf32> to vector<8xf32>
    %99 = vector.shape_cast %98 : vector<8xf32> to vector<8x1xf32>
    %cst_62 = arith.constant 1.280000e+02 : f32
    %100 = vector.broadcast %cst_62 : f32 to vector<8x1xf32>
    %101 = arith.divf %99, %100 : vector<8x1xf32>
    %102 = vector.broadcast %94 : vector<8x1xf32> to vector<8x128xf32>
    %103 = arith.subf %88, %102 : vector<8x128xf32>
    %cst_63 = arith.constant 9.99999974E-6 : f32
    %104 = vector.broadcast %cst_63 : f32 to vector<8x1xf32>
    %105 = arith.addf %101, %104 : vector<8x1xf32>
    %106 = math.rsqrt %105 : vector<8x1xf32>
    %107 = vector.broadcast %106 : vector<8x1xf32> to vector<8x128xf32>
    %108 = arith.mulf %103, %107 : vector<8x128xf32>
    %109 = vector.broadcast %89 : vector<1x128xf32> to vector<8x128xf32>
    %110 = arith.mulf %108, %109 : vector<8x128xf32>
    %111 = vector.broadcast %90 : vector<1x128xf32> to vector<8x128xf32>
    %112 = arith.addf %110, %111 : vector<8x128xf32>
    %c0_64 = arith.constant 0 : index
    %c0_65 = arith.constant 0 : index
    %113 = vector.load %arg7[%c0_64, %c0_65] : memref<1x128xf32, #tpu.memory_space<vmem>>, vector<1x128xf32>
    %c0_66 = arith.constant 0 : index
    %c0_67 = arith.constant 0 : index
    %114 = vector.load %arg8[%c0_66, %c0_67] : memref<1x128xf32, #tpu.memory_space<vmem>>, vector<1x128xf32>
    %cst_68 = arith.constant dense<0.000000e+00> : vector<64xf32>
    %115 = vector.multi_reduction <add>, %37, %cst_68 [1] : vector<64x128xf32> to vector<64xf32>
    %116 = vector.shape_cast %115 : vector<64xf32> to vector<64x1xf32>
    %cst_69 = arith.constant 1.280000e+02 : f32
    %117 = vector.broadcast %cst_69 : f32 to vector<64x1xf32>
    %118 = arith.divf %116, %117 : vector<64x1xf32>
    %119 = vector.broadcast %118 : vector<64x1xf32> to vector<64x128xf32>
    %120 = arith.subf %37, %119 : vector<64x128xf32>
    %121 = arith.mulf %120, %120 : vector<64x128xf32>
    %cst_70 = arith.constant dense<0.000000e+00> : vector<64xf32>
    %122 = vector.multi_reduction <add>, %121, %cst_70 [1] : vector<64x128xf32> to vector<64xf32>
    %123 = vector.shape_cast %122 : vector<64xf32> to vector<64x1xf32>
    %cst_71 = arith.constant 1.280000e+02 : f32
    %124 = vector.broadcast %cst_71 : f32 to vector<64x1xf32>
    %125 = arith.divf %123, %124 : vector<64x1xf32>
    %126 = vector.broadcast %118 : vector<64x1xf32> to vector<64x128xf32>
    %127 = arith.subf %37, %126 : vector<64x128xf32>
    %cst_72 = arith.constant 9.99999974E-6 : f32
    %128 = vector.broadcast %cst_72 : f32 to vector<64x1xf32>
    %129 = arith.addf %125, %128 : vector<64x1xf32>
    %130 = math.rsqrt %129 : vector<64x1xf32>
    %131 = vector.broadcast %130 : vector<64x1xf32> to vector<64x128xf32>
    %132 = arith.mulf %127, %131 : vector<64x128xf32>
    %133 = vector.broadcast %113 : vector<1x128xf32> to vector<64x128xf32>
    %134 = arith.mulf %132, %133 : vector<64x128xf32>
    %135 = vector.broadcast %114 : vector<1x128xf32> to vector<64x128xf32>
    %136 = arith.addf %134, %135 : vector<64x128xf32>
    %cst_73 = arith.constant dense<0.000000e+00> : vector<64x8xf32>
    %137 = tpu.matmul %136, %112, %cst_73 {dimension_numbers = #tpu.dot_dimension_numbers<[1], [1], [0], [0], [0, 0, 1, 0], [], []>} : vector<64x128xf32>, vector<8x128xf32>, vector<64x8xf32> -> vector<64x8xf32>
    %cst_74 = arith.constant 0.0883883461 : f32
    %138 = vector.broadcast %cst_74 : f32 to vector<64x8xf32>
    %139 = arith.mulf %137, %138 : vector<64x8xf32>
    %cst_75 = arith.constant dense<0xFF800000> : vector<64xf32>
    %140 = vector.multi_reduction <maximumf>, %139, %cst_75 [1] : vector<64x8xf32> to vector<64xf32>
    %141 = vector.shape_cast %140 : vector<64xf32> to vector<64x1xf32>
    %142 = vector.broadcast %141 : vector<64x1xf32> to vector<64x8xf32>
    %143 = arith.subf %139, %142 : vector<64x8xf32>
    %144 = math.exp %143 : vector<64x8xf32>
    %cst_76 = arith.constant dense<0.000000e+00> : vector<64xf32>
    %145 = vector.multi_reduction <add>, %144, %cst_76 [1] : vector<64x8xf32> to vector<64xf32>
    %146 = vector.shape_cast %145 : vector<64xf32> to vector<64x1xf32>
    %147 = tpu.reciprocal %146 {approx = true} : vector<64x1xf32> -> vector<64x1xf32>
    %148 = vector.broadcast %147 : vector<64x1xf32> to vector<64x8xf32>
    %149 = arith.mulf %144, %148 : vector<64x8xf32>
    %cst_77 = arith.constant dense<0.000000e+00> : vector<64x128xf32>
    %150 = tpu.matmul %149, %112, %cst_77 {dimension_numbers = #tpu.dot_dimension_numbers<[1], [0], [0], [1], [0, 0, 1, 1], [], []>} : vector<64x8xf32>, vector<8x128xf32>, vector<64x128xf32> -> vector<64x128xf32>
    %151 = arith.addf %37, %150 : vector<64x128xf32>
    %c0_78 = arith.constant 0 : index
    %c0_79 = arith.constant 0 : index
    %152 = vector.load %arg9[%c0_78, %c0_79] : memref<1x128xf32, #tpu.memory_space<vmem>>, vector<1x128xf32>
    %c0_80 = arith.constant 0 : index
    %c0_81 = arith.constant 0 : index
    %153 = vector.load %arg10[%c0_80, %c0_81] : memref<1x128xf32, #tpu.memory_space<vmem>>, vector<1x128xf32>
    %cst_82 = arith.constant dense<0.000000e+00> : vector<64xf32>
    %154 = vector.multi_reduction <add>, %86, %cst_82 [1] : vector<64x128xf32> to vector<64xf32>
    %155 = vector.shape_cast %154 : vector<64xf32> to vector<64x1xf32>
    %cst_83 = arith.constant 1.280000e+02 : f32
    %156 = vector.broadcast %cst_83 : f32 to vector<64x1xf32>
    %157 = arith.divf %155, %156 : vector<64x1xf32>
    %158 = vector.broadcast %157 : vector<64x1xf32> to vector<64x128xf32>
    %159 = arith.subf %86, %158 : vector<64x128xf32>
    %160 = arith.mulf %159, %159 : vector<64x128xf32>
    %cst_84 = arith.constant dense<0.000000e+00> : vector<64xf32>
    %161 = vector.multi_reduction <add>, %160, %cst_84 [1] : vector<64x128xf32> to vector<64xf32>
    %162 = vector.shape_cast %161 : vector<64xf32> to vector<64x1xf32>
    %cst_85 = arith.constant 1.280000e+02 : f32
    %163 = vector.broadcast %cst_85 : f32 to vector<64x1xf32>
    %164 = arith.divf %162, %163 : vector<64x1xf32>
    %165 = vector.broadcast %157 : vector<64x1xf32> to vector<64x128xf32>
    %166 = arith.subf %86, %165 : vector<64x128xf32>
    %cst_86 = arith.constant 9.99999974E-6 : f32
    %167 = vector.broadcast %cst_86 : f32 to vector<64x1xf32>
    %168 = arith.addf %164, %167 : vector<64x1xf32>
    %169 = math.rsqrt %168 : vector<64x1xf32>
    %170 = vector.broadcast %169 : vector<64x1xf32> to vector<64x128xf32>
    %171 = arith.mulf %166, %170 : vector<64x128xf32>
    %172 = vector.broadcast %152 : vector<1x128xf32> to vector<64x128xf32>
    %173 = arith.mulf %171, %172 : vector<64x128xf32>
    %174 = vector.broadcast %153 : vector<1x128xf32> to vector<64x128xf32>
    %175 = arith.addf %173, %174 : vector<64x128xf32>
    %cst_87 = arith.constant dense<0.000000e+00> : vector<64x8xf32>
    %176 = tpu.matmul %175, %112, %cst_87 {dimension_numbers = #tpu.dot_dimension_numbers<[1], [1], [0], [0], [0, 0, 1, 0], [], []>} : vector<64x128xf32>, vector<8x128xf32>, vector<64x8xf32> -> vector<64x8xf32>
    %cst_88 = arith.constant 0.0883883461 : f32
    %177 = vector.broadcast %cst_88 : f32 to vector<64x8xf32>
    %178 = arith.mulf %176, %177 : vector<64x8xf32>
    %cst_89 = arith.constant dense<0xFF800000> : vector<64xf32>
    %179 = vector.multi_reduction <maximumf>, %178, %cst_89 [1] : vector<64x8xf32> to vector<64xf32>
    %180 = vector.shape_cast %179 : vector<64xf32> to vector<64x1xf32>
    %181 = vector.broadcast %180 : vector<64x1xf32> to vector<64x8xf32>
    %182 = arith.subf %178, %181 : vector<64x8xf32>
    %183 = math.exp %182 : vector<64x8xf32>
    %cst_90 = arith.constant dense<0.000000e+00> : vector<64xf32>
    %184 = vector.multi_reduction <add>, %183, %cst_90 [1] : vector<64x8xf32> to vector<64xf32>
    %185 = vector.shape_cast %184 : vector<64xf32> to vector<64x1xf32>
    %186 = tpu.reciprocal %185 {approx = true} : vector<64x1xf32> -> vector<64x1xf32>
    %187 = vector.broadcast %186 : vector<64x1xf32> to vector<64x8xf32>
    %188 = arith.mulf %183, %187 : vector<64x8xf32>
    %cst_91 = arith.constant dense<0.000000e+00> : vector<64x128xf32>
    %189 = tpu.matmul %188, %112, %cst_91 {dimension_numbers = #tpu.dot_dimension_numbers<[1], [0], [0], [1], [0, 0, 1, 1], [], []>} : vector<64x8xf32>, vector<8x128xf32>, vector<64x128xf32> -> vector<64x128xf32>
    %190 = arith.addf %86, %189 : vector<64x128xf32>
    %cst_92 = arith.constant dense<0.000000e+00> : vector<64xf32>
    %191 = vector.multi_reduction <add>, %151, %cst_92 [1] : vector<64x128xf32> to vector<64xf32>
    %192 = vector.shape_cast %191 : vector<64xf32> to vector<64x1xf32>
    %cst_93 = arith.constant dense<0.000000e+00> : vector<64xf32>
    %193 = vector.multi_reduction <add>, %190, %cst_93 [1] : vector<64x128xf32> to vector<64xf32>
    %194 = vector.shape_cast %193 : vector<64xf32> to vector<64x1xf32>
    %195 = arith.addf %192, %194 : vector<64x1xf32>
    %cst_94 = arith.constant 3.906250e-03 : f32
    %196 = vector.broadcast %cst_94 : f32 to vector<64x1xf32>
    %197 = arith.mulf %195, %196 : vector<64x1xf32>
    %cst_95 = arith.constant dense<0xFF800000> : vector<64xf32>
    %198 = vector.multi_reduction <maximumf>, %151, %cst_95 [1] : vector<64x128xf32> to vector<64xf32>
    %199 = vector.shape_cast %198 : vector<64xf32> to vector<64x1xf32>
    %cst_96 = arith.constant dense<0xFF800000> : vector<64xf32>
    %200 = vector.multi_reduction <maximumf>, %190, %cst_96 [1] : vector<64x128xf32> to vector<64xf32>
    %201 = vector.shape_cast %200 : vector<64xf32> to vector<64x1xf32>
    %202 = arith.maximumf %199, %201 : vector<64x1xf32>
    %c0_97 = arith.constant 0 : index
    %c0_98 = arith.constant 0 : index
    %c0_99 = arith.constant 0 : index
    %203 = vector.load %arg13[%c0_97, %c0_98, %c0_99] : memref<4x64x64xf32, #tpu.memory_space<vmem>>, vector<1x64x64xf32>
    %204 = vector.shape_cast %203 : vector<1x64x64xf32> to vector<64x64xf32>
    %cst_100 = arith.constant dense<0.000000e+00> : vector<64x1xf32>
    %205 = tpu.matmul %204, %197, %cst_100 {dimension_numbers = #tpu.dot_dimension_numbers<[1], [0], [0], [1], [0, 0, 1, 1], [], []>} : vector<64x64xf32>, vector<64x1xf32>, vector<64x1xf32> -> vector<64x1xf32>
    %c1_101 = arith.constant 1 : index
    %c0_102 = arith.constant 0 : index
    %c0_103 = arith.constant 0 : index
    %206 = vector.load %arg13[%c1_101, %c0_102, %c0_103] : memref<4x64x64xf32, #tpu.memory_space<vmem>>, vector<1x64x64xf32>
    %207 = vector.shape_cast %206 : vector<1x64x64xf32> to vector<64x64xf32>
    %cst_104 = arith.constant dense<0.000000e+00> : vector<64x1xf32>
    %208 = tpu.matmul %207, %202, %cst_104 {dimension_numbers = #tpu.dot_dimension_numbers<[1], [0], [0], [1], [0, 0, 1, 1], [], []>} : vector<64x64xf32>, vector<64x1xf32>, vector<64x1xf32> -> vector<64x1xf32>
    %209 = arith.addf %205, %208 : vector<64x1xf32>
    %210 = arith.negf %209 : vector<64x1xf32>
    %211 = math.exp %210 : vector<64x1xf32>
    %cst_105 = arith.constant 1.000000e+00 : f32
    %212 = vector.broadcast %cst_105 : f32 to vector<64x1xf32>
    %213 = arith.addf %212, %211 : vector<64x1xf32>
    %214 = arith.divf %212, %213 : vector<64x1xf32>
    %c2_106 = arith.constant 2 : index
    %c0_107 = arith.constant 0 : index
    %c0_108 = arith.constant 0 : index
    %215 = vector.load %arg13[%c2_106, %c0_107, %c0_108] : memref<4x64x64xf32, #tpu.memory_space<vmem>>, vector<1x64x64xf32>
    %216 = vector.shape_cast %215 : vector<1x64x64xf32> to vector<64x64xf32>
    %cst_109 = arith.constant dense<0.000000e+00> : vector<64x1xf32>
    %217 = tpu.matmul %216, %197, %cst_109 {dimension_numbers = #tpu.dot_dimension_numbers<[1], [0], [0], [1], [0, 0, 1, 1], [], []>} : vector<64x64xf32>, vector<64x1xf32>, vector<64x1xf32> -> vector<64x1xf32>
    %c3_110 = arith.constant 3 : index
    %c0_111 = arith.constant 0 : index
    %c0_112 = arith.constant 0 : index
    %218 = vector.load %arg13[%c3_110, %c0_111, %c0_112] : memref<4x64x64xf32, #tpu.memory_space<vmem>>, vector<1x64x64xf32>
    %219 = vector.shape_cast %218 : vector<1x64x64xf32> to vector<64x64xf32>
    %cst_113 = arith.constant dense<0.000000e+00> : vector<64x1xf32>
    %220 = tpu.matmul %219, %202, %cst_113 {dimension_numbers = #tpu.dot_dimension_numbers<[1], [0], [0], [1], [0, 0, 1, 1], [], []>} : vector<64x64xf32>, vector<64x1xf32>, vector<64x1xf32> -> vector<64x1xf32>
    %221 = arith.addf %217, %220 : vector<64x1xf32>
    %222 = arith.negf %221 : vector<64x1xf32>
    %223 = math.exp %222 : vector<64x1xf32>
    %cst_114 = arith.constant 1.000000e+00 : f32
    %224 = vector.broadcast %cst_114 : f32 to vector<64x1xf32>
    %225 = arith.addf %224, %223 : vector<64x1xf32>
    %226 = arith.divf %224, %225 : vector<64x1xf32>
    %227 = vector.broadcast %214 : vector<64x1xf32> to vector<64x128xf32>
    %228 = arith.mulf %151, %227 : vector<64x128xf32>
    %229 = vector.broadcast %226 : vector<64x1xf32> to vector<64x128xf32>
    %230 = arith.mulf %190, %229 : vector<64x128xf32>
    %231 = arith.addf %228, %230 : vector<64x128xf32>
    %232 = arith.truncf %231 : vector<64x128xf32> to vector<64x128xbf16>
    %c0_115 = arith.constant 0 : index
    %c0_116 = arith.constant 0 : index
    %233 = vector.load %arg14[%c0_115, %c0_116] : memref<128x128xbf16, #tpu.memory_space<vmem>>, vector<128x128xbf16>
    %cst_117 = arith.constant dense<0.000000e+00> : vector<64x128xf32>
    %234 = tpu.matmul %232, %233, %cst_117 {dimension_numbers = #tpu.dot_dimension_numbers<[1], [0], [0], [1], [0, 0, 1, 1], [], []>} : vector<64x128xbf16>, vector<128x128xbf16>, vector<64x128xf32> -> vector<64x128xf32>
    %c0_118 = arith.constant 0 : index
    %c0_119 = arith.constant 0 : index
    %c0_120 = arith.constant 0 : index
    %235 = vector.load %arg15[%c0_118, %c0_119, %c0_120] : memref<1x64x128xf32, #tpu.memory_space<vmem>>, vector<1x64x128xf32>
    %236 = vector.shape_cast %235 : vector<1x64x128xf32> to vector<64x128xf32>
    %237 = vector.shape_cast %234 : vector<64x128xf32> to vector<1x64x128xf32>
    tpu.vector_store %arg15[%c0_118, %c0_119, %c0_120], %237 {strides = array<i32>} : memref<1x64x128xf32, #tpu.memory_space<vmem>>, vector<1x64x128xf32>,
    return
  }
  func.func @transform_0(%arg0: i32) -> (i32, i32, i32, i32) {
    %c0_i32 = arith.constant 0 : i32
    %c0_i32_0 = arith.constant 0 : i32
    %c0_i32_1 = arith.constant 0 : i32
    %c0_i32_2 = arith.constant 0 : i32
    return %arg0, %c0_i32, %c0_i32_0, %c0_i32_1 : i32, i32, i32, i32
  }
  func.func @transform_1(%arg0: i32) -> (i32, i32, i32) {
    %c0_i32 = arith.constant 0 : i32
    %c0_i32_0 = arith.constant 0 : i32
    %c0_i32_1 = arith.constant 0 : i32
    return %arg0, %c0_i32, %c0_i32_0 : i32, i32, i32
  }
  func.func @transform_2(%arg0: i32) -> (i32, i32) {
    %c0_i32 = arith.constant 0 : i32
    %c0_i32_0 = arith.constant 0 : i32
    %c0_i32_1 = arith.constant 0 : i32
    return %c0_i32, %c0_i32_0 : i32, i32
  }
  func.func @transform_3(%arg0: i32) -> (i32, i32, i32) {
    %c0_i32 = arith.constant 0 : i32
    %c0_i32_0 = arith.constant 0 : i32
    %c0_i32_1 = arith.constant 0 : i32
    %c0_i32_2 = arith.constant 0 : i32
    return %c0_i32, %c0_i32_0, %c0_i32_1 : i32, i32, i32
  }
  func.func @transform_4(%arg0: i32) -> (i32, i32) {
    %c0_i32 = arith.constant 0 : i32
    %c0_i32_0 = arith.constant 0 : i32
    %c0_i32_1 = arith.constant 0 : i32
    return %c0_i32, %c0_i32_0 : i32, i32
  }
  func.func @transform_5(%arg0: i32) -> (i32, i32) {
    %c0_i32 = arith.constant 0 : i32
    %c0_i32_0 = arith.constant 0 : i32
    %c0_i32_1 = arith.constant 0 : i32
    return %c0_i32, %c0_i32_0 : i32, i32
  }
  func.func @transform_6(%arg0: i32) -> (i32, i32) {
    %c0_i32 = arith.constant 0 : i32
    %c0_i32_0 = arith.constant 0 : i32
    %c0_i32_1 = arith.constant 0 : i32
    return %c0_i32, %c0_i32_0 : i32, i32
  }
  func.func @transform_7(%arg0: i32) -> (i32, i32) {
    %c0_i32 = arith.constant 0 : i32
    %c0_i32_0 = arith.constant 0 : i32
    %c0_i32_1 = arith.constant 0 : i32
    return %c0_i32, %c0_i32_0 : i32, i32
  }
  func.func @transform_8(%arg0: i32) -> (i32, i32) {
    %c0_i32 = arith.constant 0 : i32
    %c0_i32_0 = arith.constant 0 : i32
    %c0_i32_1 = arith.constant 0 : i32
    return %c0_i32, %c0_i32_0 : i32, i32
  }
  func.func @transform_9(%arg0: i32) -> (i32, i32) {
    %c0_i32 = arith.constant 0 : i32
    %c0_i32_0 = arith.constant 0 : i32
    %c0_i32_1 = arith.constant 0 : i32
    return %c0_i32, %c0_i32_0 : i32, i32
  }
  func.func @transform_10(%arg0: i32) -> (i32, i32) {
    %c0_i32 = arith.constant 0 : i32
    %c0_i32_0 = arith.constant 0 : i32
    %c0_i32_1 = arith.constant 0 : i32
    return %c0_i32, %c0_i32_0 : i32, i32
  }
  func.func @transform_11(%arg0: i32) -> (i32, i32) {
    %c0_i32 = arith.constant 0 : i32
    %c0_i32_0 = arith.constant 0 : i32
    %c0_i32_1 = arith.constant 0 : i32
    return %c0_i32, %c0_i32_0 : i32, i32
  }
  func.func @transform_12(%arg0: i32) -> (i32, i32, i32) {
    %c0_i32 = arith.constant 0 : i32
    %c0_i32_0 = arith.constant 0 : i32
    %c0_i32_1 = arith.constant 0 : i32
    %c0_i32_2 = arith.constant 0 : i32
    return %c0_i32, %c0_i32_0, %c0_i32_1 : i32, i32, i32
  }
  func.func @transform_13(%arg0: i32) -> (i32, i32) {
    %c0_i32 = arith.constant 0 : i32
    %c0_i32_0 = arith.constant 0 : i32
    %c0_i32_1 = arith.constant 0 : i32
    return %c0_i32, %c0_i32_0 : i32, i32
  }
  func.func @transform_14(%arg0: i32) -> (i32, i32, i32) {
    %c0_i32 = arith.constant 0 : i32
    %c0_i32_0 = arith.constant 0 : i32
    %c0_i32_1 = arith.constant 0 : i32
    return %arg0, %c0_i32, %c0_i32_0 : i32, i32, i32
  }
}

</mosaic_0001>

<bundles_post_ra>
// kernel: local_adapter_forward.1
= control target key start
LH: loop header
LB: loop body
LE: loop exit
PB: predicated region body
PF: predicated region fallthrough
CT: control target
= control target key end

     0   :  { %s5537_s29 = smov 0   ;;  %s6662_s0 = inlined_call_operand.vmem [shape: f32[2,3,80,128], index: 0, kind: input, shape index: {}]   ;;  %s6663_s1 = inlined_call_operand.vmem [shape: f32[2,8,128], index: 1, kind: input, shape index: {}]   ;;  %s6664_s2 = inlined_call_operand.vmem [shape: bf16[128,128], index: 2, kind: input, shape index: {}]   ;;  %s6665_s3 = inlined_call_operand.vmem [shape: bf16[9,128,128], index: 3, kind: input, shape index: {}]   ;;  %s6666_s4 = inlined_call_operand.vmem [shape: f32[1,128], index: 4, kind: input, shape index: {}]   ;;  %s6667_s5 = inlined_call_operand.vmem [shape: f32[1,128], index: 5, kind: input, shape index: {}]   ;;  %s6668_s6 = inlined_call_operand.vmem [shape: f32[1,128], index: 6, kind: input, shape index: {}]   ;;  %s6669_s7 = inlined_call_operand.vmem [shape: f32[1,128], index: 7, kind: input, shape index: {}]   ;;  %s6670_s8 = inlined_call_operand.vmem [shape: f32[1,128], index: 8, kind: input, shape index: {}]   ;;  %s6671_s9 = inlined_call_operand.vmem [shape: f32[1,128], index: 9, kind: input, shape index: {}]   ;;  %s6672_s10 = inlined_call_operand.vmem [shape: f32[1,128], index: 10, kind: input, shape index: {}]   ;;  %s6673_s11 = inlined_call_operand.vmem [shape: f32[1,128], index: 11, kind: input, shape index: {}]   ;;  %s6674_s12 = inlined_call_operand.vmem [shape: f32[4,64,64], index: 12, kind: input, shape index: {}]   ;;  %s6675_s13 = inlined_call_operand.vmem [shape: bf16[128,128], index: 13, kind: input, shape index: {}]   ;;  %s6676_s14 = inlined_call_operand.vmem [shape: f32[2,64,128], index: 14, kind: output, shape index: {}]  }
   0x1 LB: > { %s3991_s30 = sadd.s32 4294967295, %s5459_s29   ;;  %p3995_p0 = scmp.ge.s32.totalorder %s5459_s29, 1  ;;  %s5459_s29 = sphi %s5537_s29, %s24_s29  }
   0x2   : > { %p421_p1 = scmp.lt.s32.totalorder %s5459_s29, 3 }
   0x4   : > { %p422_p2 = pnand %p3995_p0, %p421_p1 }
   0x5   : > { %v5171_v0 = vld [vmem:[%s6665_s3 + $0xc0] sm:$0xff] (!%p422_p2)   ;;  %p471_p3 = scmp.lt.s32.totalorder (!%p422_p2), %s3991_s30, 1  ;;  %v5173_v2 = vld [vmem:[%s6665_s3 + $0xc8] sm:$0xff] (!%p422_p2)   ;;  %v5175_v4 = vld [vmem:[%s6665_s3 + $0xd0] sm:$0xff] (!%p422_p2)   ;;  %vm2261_vm0 = vcmask (!%p422_p2), 64512   ;;  %vm3048_vm1 = vcmask (!%p422_p2), 523264  }
   0x6   : > { %425 = sbr.rel (%p422_p2) target bundleno = 2749 (0xabd), region = 76  ;;  %v5172_v1 = vld [vmem:[%s6665_s3] sm:$0xff] (!%p422_p2)   ;;  %4567 = vmatprep.subr.bf16.mxu1 (!%p422_p2), %v5171_v0  ;;  %v5174_v3 = vld [vmem:[%s6665_s3 + $0x8] sm:$0xff] (!%p422_p2)   ;;  %v5176_v5 = vld [vmem:[%s6665_s3 + $0x10] sm:$0xff] (!%p422_p2)  }
   0x7   : > { %4591 = vmatprep.subr.bf16.mxu0 (!%p422_p2), %v5172_v1  ;;  %4568 = vmatpush3.bf16.msra.mxu1 (!%p422_p2), %v5171_v0  ;;  %v5177_v6 = vld [vmem:[%s6665_s3 + $0xd8] sm:$0xff] (!%p422_p2)   ;;  %v5179_v8 = vld [vmem:[%s6665_s3 + $0xe0] sm:$0xff] (!%p422_p2)   ;;  %v5181_v10 = vld [vmem:[%s6665_s3 + $0xe8] sm:$0xff] (!%p422_p2)  }
   0x8   : > { %4592 = vmatpush3.bf16.msra.mxu0 (!%p422_p2), %v5172_v1  ;;  %4569 = vmatprep.subr.bf16.mxu1 (!%p422_p2), %v5173_v2  ;;  %v5178_v7 = vld [vmem:[%s6665_s3 + $0x18] sm:$0xff] (!%p422_p2)   ;;  %v5180_v9 = vld [vmem:[%s6665_s3 + $0x20] sm:$0xff] (!%p422_p2)   ;;  %v5182_v13 = vld [vmem:[%s6665_s3 + $0x28] sm:$0xff] (!%p422_p2)  }
   0x9   : > { %4593 = vmatprep.subr.bf16.mxu0 (!%p422_p2), %v5174_v3  ;;  %v5183_v17 = vld [vmem:[%s6665_s3 + $0xf0] sm:$0xff] (!%p422_p2)   ;;  %v5185_v19 = vld [vmem:[%s6665_s3 + $0xf8] sm:$0xff] (!%p422_p2)   ;;  %v5188_v23 = vld [vmem:[%s6664_s2] sm:$0xff] (!%p422_p2)  }
   0xa   : > { %v5184_v18 = vld [vmem:[%s6665_s3 + $0x30] sm:$0xff] (!%p422_p2)   ;;  %v5186_v20 = vld [vmem:[%s6665_s3 + $0x38] sm:$0xff] (!%p422_p2)   ;;  %v5187_v24 = vld [vmem:[%s6665_s3 + $0x180] sm:$0xff] (!%p422_p2)  }
   0xb   : > { %4570 = vmatpush3.bf16.msra.mxu1 (!%p422_p2), %v5173_v2  ;;  %v5190_v29 = vld [vmem:[%s6664_s2 + $0x8] sm:$0xff] (!%p422_p2)   ;;  %v5192_v35 = vld [vmem:[%s6664_s2 + $0x10] sm:$0xff] (!%p422_p2)   ;;  %v5194_v41 = vld [vmem:[%s6664_s2 + $0x18] sm:$0xff] (!%p422_p2)  }
   0xc   : > { %4594 = vmatpush3.bf16.msra.mxu0 (!%p422_p2), %v5174_v3  ;;  %4571 = vmatprep.subr.bf16.mxu1 (!%p422_p2), %v5175_v4  ;;  %v5189_v30 = vld [vmem:[%s6665_s3 + $0x188] sm:$0xff] (!%p422_p2)   ;;  %v5191_v36 = vld [vmem:[%s6665_s3 + $0x190] sm:$0xff] (!%p422_p2)   ;;  %v5193_v42 = vld [vmem:[%s6665_s3 + $0x198] sm:$0xff] (!%p422_p2)  }
   0xd   : > { %s6678_s30 = smov (!%p471_p3, %s3991_s30), 1  ;;  %4595 = vmatprep.subr.bf16.mxu0 %v5176_v5  ;;  %v5196_v44 = vld [vmem:[%s6664_s2 + $0x20] sm:$0xff]   ;;  %v5198_v46 = vld [vmem:[%s6664_s2 + $0x28] sm:$0xff]   ;;  %v5200_v48 = vld [vmem:[%s6664_s2 + $0x30] sm:$0xff]  }
   0xe   : > { %s5159_s17 = smul.u32 240, %s6678_s30  ;;  %v5195_v45 = vld [vmem:[%s6665_s3 + $0x1a0] sm:$0xff]   ;;  %v5197_v47 = vld [vmem:[%s6665_s3 + $0x1a8] sm:$0xff]   ;;  %v5199_v49 = vld [vmem:[%s6665_s3 + $0x1b0] sm:$0xff]   ;;  %s3997_s16 = sshll.u32 %s6678_s30, 3 }
   0xf   : > { %4572 = vmatpush3.bf16.msra.mxu1 %v5175_v4  ;;  %v5201_v50 = vld [vmem:[%s6665_s3 + $0x1b8] sm:$0xff]   ;;  %v5203_v56 = vld [vmem:[%s6665_s3 + $0x40] sm:$0xff]   ;;  %s479_s21 = scalar_lea.vmem %s6663_s1, %s3997_s16  ;;  %v5204_v60 = vld [vmem:[%s6665_s3 + $0x48] sm:$0xff]   ;;  %s4334_s22 = sshll.u32 %s6678_s30, 6 }
  0x10   : > { %4596 = vmatpush3.bf16.msra.mxu0 %v5176_v5  ;;  %4573 = vmatprep.subr.bf16.mxu1 %v5177_v6  ;;  %s5581_s24 = scalar_lea.vmem %s6662_s0, %s5159_s17  ;;  %v5202_v51 = vld [vmem:[%s6664_s2 + $0x38] sm:$0xff]   ;;  %v5702_v59 = vld [vmem:[%s479_s21] sm:$0xff]  ;;  %v5205_v0 = vld [vmem:[%s6665_s3 + $0x50] sm:$0xff]   ;;  %s484_s26 = scalar_lea.vmem %s6676_s14, %s4334_s22 }
  0x11   : > { %4597 = vmatprep.subr.bf16.mxu0 %v5178_v7  ;;  %v487_v11 = vld [vmem:[%s5581_s24 + $0x8] sm:$0xff]  ;;  %v488_v12 = vld [vmem:[%s5581_s24 + $0x10] sm:$0xff]  ;;  %v486_v15 = vld [vmem:[%s5581_s24] sm:$0xff]  ;;  %2004 = vadd.xlane.f32.xlu0 %v5702_v59 }
  0x12   : > { %v516_v14 = vpack.c.bf16 %v488_v12, %v487_v11  ;;  %v496_v16 = vpack.c.bf16 %v487_v11, %v486_v15  ;;  %v489_v21 = vld [vmem:[%s5581_s24 + $0x18] sm:$0xff]  ;;  %v490_v22 = vld [vmem:[%s5581_s24 + $0x20] sm:$0xff]  ;;  %v491_v26 = vld [vmem:[%s5581_s24 + $0x28] sm:$0xff] }
  0x13   : > { %4574 = vmatpush3.bf16.msra.mxu1 %v5177_v6  ;;  %v517_v25 = vpack.c.bf16 %v490_v22, %v489_v21  ;;  %v492_v27 = vld [vmem:[%s5581_s24 + $0x30] sm:$0xff]  ;;  %v497_v28 = vpack.c.bf16 %v489_v21, %v488_v12  ;;  %v5620_v32 = vpack.c.bf16 %v491_v26, %v490_v22  ;;  %v493_v33 = vld [vmem:[%s5581_s24 + $0x38] sm:$0xff]  ;;  %v5624_v34 = vld [vmem:[%s5581_s24 + $0x40] sm:$0xff] }
  0x14   : > { %4598 = vmatpush3.bf16.msra.mxu0 %v5178_v7  ;;  %4575 = vmatprep.subr.bf16.mxu1 %v5179_v8  ;;  %v518_v31 = vpack.c.bf16 %v492_v27, %v491_v26  ;;  %v519_v37 = vpack.c.bf16 %v5624_v34, %v493_v33  ;;  %v5635_v38 = vld [vmem:[%s5581_s24 + $0x58] sm:$0xff]  ;;  %v5638_v39 = vld [vmem:[%s5581_s24 + $0x60] sm:$0xff]  ;;  %v499_v40 = vpack.c.bf16 %v493_v33, %v492_v27  ;;  %v5676_v52 = vld [vmem:[%s5581_s24 + $0x68] sm:$0xff] }
  0x15   : > { %4599 = vmatprep.subr.bf16.mxu0 %v5180_v9  ;;  %4583 = vmatprep.mubr.bf16.mxu1 %v516_v14  ;;  %v5648_v43 = vpack.c.bf16 %v5638_v39, %v5635_v38  ;;  %v5679_v53 = vld [vmem:[%s5581_s24 + $0x70] sm:$0xff]  ;;  %v5683_v54 = vld [vmem:[%s5581_s24 + $0x78] sm:$0xff]  ;;  %v5686_v55 = vld [vmem:[%s5581_s24 + $0x80] sm:$0xff] }
  0x16   : > { %4607 = vmatprep.mubr.bf16.mxu0 %v496_v16  ;;  %v5696_v57 = vpack.c.bf16 %v5679_v53, %v5676_v52  ;;  %v5700_v58 = vpack.c.bf16 %v5686_v55, %v5683_v54  ;;  %v5710_v61 = vld [vmem:[%s5581_s24 + $0x88] sm:$0xff]  ;;  %v5715_v62 = vld [vmem:[%s5581_s24 + $0x90] sm:$0xff]  ;;  %v5206_v5 = vld [vmem:[%s6665_s3 + $0x58] sm:$0xff]   ;;  %v5802_v21 = vpack.c.bf16 %v5683_v54, %v5679_v53 }
  0x17   : > { %4576 = vmatpush3.bf16.msra.mxu1 %v5179_v8  ;;  %v495_v63 = vld [vmem:[%s5581_s24 + $0x48] sm:$0xff]  ;;  %v4056_v1 = vld [vmem:[%s5581_s24 + $0x50] sm:$0xff]  ;;  %v5724_v2 = vpack.c.bf16 %v5715_v62, %v5710_v61  ;;  %v5735_v6 = vld [vmem:[%s6665_s3 + $0x200] sm:$0xff]  }
  0x18   : > { %4600 = vmatpush3.bf16.msra.mxu0 %v5180_v9  ;;  %4577 = vmatprep.subr.bf16.mxu1 %v5181_v10  ;;  %v763_v3 = vpack.c.bf16 %v495_v63, %v5624_v34  ;;  %v1093_v4 = vpack.c.bf16 %v5635_v38, %v4056_v1  ;;  %v5207_v7 = vld [vmem:[%s6665_s3 + $0x60] sm:$0xff]   ;;  %v5745_v8 = vld [vmem:[%s6665_s3 + $0x208] sm:$0xff]   ;;  %v5209_v11 = vld [vmem:[%s6665_s3 + $0x70] sm:$0xff]  }
  0x19   : > { %4601 = vmatprep.subr.bf16.mxu0 %v5182_v13  ;;  %v5208_v9 = vld [vmem:[%s6665_s3 + $0x68] sm:$0xff]   ;;  %v5765_v12 = vld [vmem:[%s6665_s3 + $0x218] sm:$0xff]   ;;  %v5771_v14 = vld [vmem:[%s5581_s24 + $0xd0] sm:$0xff] }
  0x1a   : > { %v5774_v15 = vld [vmem:[%s5581_s24 + $0xd8] sm:$0xff]  ;;  %v5212_v22 = vld [vmem:[%s6665_s3 + $0x108] sm:$0xff]   ;;  %v5828_v27 = vld [vmem:[%s5581_s24 + $0xe0] sm:$0xff] }
  0x1b   : > { %4578 = vmatpush3.bf16.msra.mxu1 %v5181_v10  ;;  %v5755_v10 = vld [vmem:[%s6665_s3 + $0x210] sm:$0xff]   ;;  %v5779_v16 = vpack.c.bf16 %v5774_v15, %v5771_v14  ;;  %v5825_v26 = vld [vmem:[%s6665_s3 + $0x238] sm:$0xff]   ;;  %v5216_v33 = vld [vmem:[%s6665_s3 + $0x128] sm:$0xff]  }
  0x1c   : > { %4602 = vmatpush3.bf16.msra.mxu0 %v5182_v13  ;;  %4579 = vmatprep.subr.bf16.mxu1 %v5183_v17  ;;  %v5210_v13 = vld [vmem:[%s6665_s3 + $0x78] sm:$0xff]   ;;  %v5217_v34 = vld [vmem:[%s6665_s3 + $0x130] sm:$0xff]   ;;  %v5231_v53 = vld [vmem:[%s6665_s3 + $0xa0] sm:$0xff]  }
  0x1d   : > { %4603 = vmatprep.subr.bf16.mxu0 %v5184_v18  ;;  %v5221_v38 = vld [vmem:[%s6665_s3 + $0x1d0] sm:$0xff]   ;;  %v5232_v54 = vld [vmem:[%s6665_s3 + $0xa8] sm:$0xff]  }
  0x1e   : > { %v5236_v1 = vld [vmem:[%s6665_s3 + $0x148] sm:$0xff]  }
  0x1f   : > { %4580 = vmatpush3.bf16.msra.mxu1 %v5183_v17  ;;  %v5785_v17 = vld [vmem:[%s6665_s3 + $0x220] sm:$0xff]  }
  0x20   : > { %4604 = vmatpush3.bf16.msra.mxu0 %v5184_v18  ;;  %4581 = vmatprep.subr.bf16.mxu1 %v5185_v19  ;;  %v5211_v18 = vld [vmem:[%s6665_s3 + $0x100] sm:$0xff]  }
  0x21   : > { %4605 = vmatprep.subr.bf16.mxu0 %v5186_v20 }
  0x23   : > { %4582 = vmatpush3.bf16.msra.mxu1 %v5185_v19  ;;  %v1094_v19 = vpack.c.bf16 %v5676_v52, %v5638_v39  ;;  %v5222_v39 = vld [vmem:[%s6665_s3 + $0x1d8] sm:$0xff]  }
  0x24   : > { %4606 = vmatpush3.bf16.msra.mxu0 %v5186_v20  ;;  %4639 = vmatprep.subr.bf16.mxu1 %v5188_v23  ;;  %v5798_v20 = vld [vmem:[%s6665_s3 + $0x228] sm:$0xff]   ;;  %v5230_v52 = vld [vmem:[%s6665_s3 + $0x98] sm:$0xff]  }
  0x25   : > { %4615 = vmatprep.subr.bf16.mxu0 %v5187_v24 }
  0x26   : > { %4584 = vmatmul.mubr.bf16.vlgmr.msra.gmra.mrb[0].mxu1 %v517_v25  ;;  %v1096_v25 = vpack.c.bf16 %v5710_v61, %v5686_v55  ;;  %v5233_v55 = vld [vmem:[%s6665_s3 + $0xb0] sm:$0xff]   ;;  %v4151_v61 = vld [vmem:[%s5581_s24 + $0xc0] sm:$0xff] }
  0x27   : > { %4608 = vmatmul.mubr.bf16.vlgmr.msra.gmra.mrb[0].mxu0 %v497_v28  ;;  %4640 = vmatpush3.bf16.msra.mxu1 %v5188_v23  ;;  %v5812_v23 = vld [vmem:[%s6665_s3 + $0x230] sm:$0xff]  }
  0x28   : > { %4616 = vmatpush3.bf16.msra.mxu0 %v5187_v24  ;;  %4641 = vmatprep.subr.bf16.mxu1 %v5190_v29  ;;  %v5213_v24 = vld [vmem:[%s6665_s3 + $0x110] sm:$0xff]  }
  0x29   : > { %4617 = vmatprep.subr.bf16.mxu0 %v5189_v30  ;;  %4587 = vmatprep.mubr.bf16.mxu1 %v518_v31 }
  0x2a   : > { %4611 = vmatprep.mubr.bf16.mxu0 %v5620_v32 }
  0x2b   : > { %4642 = vmatpush3.bf16.msra.mxu1 %v5190_v29  ;;  %v5214_v29 = vld [vmem:[%s6665_s3 + $0x118] sm:$0xff]  }
  0x2c   : > { %4618 = vmatpush3.bf16.msra.mxu0 %v5189_v30  ;;  %4643 = vmatprep.subr.bf16.mxu1 %v5192_v35  ;;  %v1668_v30 = vpack.c.bf16 %v5828_v27, %v5774_v15 }
  0x2d   : > { %4619 = vmatprep.subr.bf16.mxu0 %v5191_v36 }
  0x2e   : > { %4588 = vmatmul.mubr.bf16.gmra.mrb[4].mxu1 %v519_v37  ;;  %v5220_v37 = vld [vmem:[%s6665_s3 + $0x1c8] sm:$0xff]  }
  0x2f   : > { %4644 = vmatpush3.bf16.msra.mxu1 %v5192_v35  ;;  %4612 = vmatmul.mubr.bf16.gmra.mrb[4].mxu0 %v499_v40  ;;  %v5218_v35 = vld [vmem:[%s6665_s3 + $0x138] sm:$0xff]  }
  0x30   : > { %4620 = vmatpush3.bf16.msra.mxu0 %v5191_v36  ;;  %4645 = vmatprep.subr.bf16.mxu1 %v5194_v41  ;;  %v5219_v36 = vld [vmem:[%s6665_s3 + $0x1c0] sm:$0xff]  }
  0x31   : > { %4621 = vmatprep.subr.bf16.mxu0 %v5193_v42  ;;  %4655 = vmatprep.mubr.bf16.mxu1 %v5648_v43 }
  0x32   : > { %4631 = vmatprep.mubr.bf16.mxu0 %v497_v28  ;;  %v4156_v28 = vld [vmem:[%s5581_s24 + $0xe8] sm:$0xff] }
  0x33   : > { %4646 = vmatpush3.bf16.msra.mxu1 %v5194_v41  ;;  %v1807_v31 = vpack.c.bf16 %v4156_v28, %v5828_v27  ;;  %v5224_v41 = vld [vmem:[%s6665_s3 + $0x1e8] sm:$0xff]  }
  0x34   : > { %4622 = vmatpush3.bf16.msra.mxu0 %v5193_v42  ;;  %4647 = vmatprep.subr.bf16.mxu1 %v5196_v44  ;;  %v5225_v42 = vld [vmem:[%s6665_s3 + $0x1f0] sm:$0xff]  }
  0x35   : > { %4623 = vmatprep.subr.bf16.mxu0 %v5195_v45 }
  0x37   : > { %4648 = vmatpush3.bf16.msra.mxu1 %v5196_v44  ;;  %v5227_v44 = vld [vmem:[%s6665_s3 + $0x80] sm:$0xff]  }
  0x38   : > { %4624 = vmatpush3.bf16.msra.mxu0 %v5195_v45  ;;  %4649 = vmatprep.subr.bf16.mxu1 %v5198_v46  ;;  %v5228_v45 = vld [vmem:[%s6665_s3 + $0x88] sm:$0xff]  }
  0x39   : > { %4625 = vmatprep.subr.bf16.mxu0 %v5197_v47 }
  0x3b   : > { %4650 = vmatpush3.bf16.msra.mxu1 %v5198_v46  ;;  %v4065_v46 = vld [vmem:[%s5581_s24 + $0x98] sm:$0xff] }
  0x3c   : > { %4626 = vmatpush3.bf16.msra.mxu0 %v5197_v47  ;;  %4651 = vmatprep.subr.bf16.mxu1 %v5200_v48  ;;  %v5229_v47 = vld [vmem:[%s6665_s3 + $0x90] sm:$0xff]  }
  0x3d   : > { %4627 = vmatprep.subr.bf16.mxu0 %v5199_v49 }
  0x3f   : > { %4652 = vmatpush3.bf16.msra.mxu1 %v5200_v48  ;;  %v4147_v48 = vld [vmem:[%s5581_s24 + $0xa0] sm:$0xff] }
  0x40   : > { %4628 = vmatpush3.bf16.msra.mxu0 %v5199_v49  ;;  %4653 = vmatprep.subr.bf16.mxu1 %v5202_v51  ;;  %v4148_v49 = vld [vmem:[%s5581_s24 + $0xa8] sm:$0xff] }
  0x41   : > { %4629 = vmatprep.subr.bf16.mxu0 %v5201_v50 }
  0x43   : > { %4654 = vmatpush3.bf16.msra.mxu1 %v5202_v51  ;;  %v1523_v51 = vpack.c.bf16 %v4148_v49, %v4147_v48 }
  0x44   : > { %4630 = vmatpush3.bf16.msra.mxu0 %v5201_v50  ;;  %5063 = vmatprep.subr.bf16.mxu1 %v5735_v6  ;;  %v1373_v50 = vpack.c.bf16 %v4065_v46, %v5715_v62  ;;  %v4152_v62 = vld [vmem:[%s5581_s24 + $0xc8] sm:$0xff] }
  0x45   : > { %4663 = vmatprep.subr.bf16.mxu0 %v5203_v56 }
  0x46   : > { %4656 = vmatmul.mubr.bf16.vlgmr.msra.gmra.mrb[8].mxu1 %v5696_v57 }
  0x47   : > { %4632 = vmatmul.mubr.bf16.vlgmr.msra.gmra.mrb[0].mxu0 %v5620_v32  ;;  %4659 = vmatprep.mubr.bf16.mxu1 %v5700_v58  ;;  %v5215_v32 = vld [vmem:[%s6665_s3 + $0x120] sm:$0xff]  }
  0x48   : > { %4664 = vmatpush3.bf16.msra.mxu0 %v5203_v56  ;;  %4635 = vmatprep.mubr.bf16.mxu0 %v499_v40  ;;  %v5223_v40 = vld [vmem:[%s6665_s3 + $0x1e0] sm:$0xff]   ;;  %v5234_v56 = vld [vmem:[%s6665_s3 + $0xb8] sm:$0xff]  }
  0x49   : > { %4665 = vmatprep.subr.bf16.mxu0 %v5204_v60  ;;  %5071 = vmatpush3.bf16.msra.mxu1 %v5735_v6 }
  0x4a   : > { %5064 = vmatprep.subr.bf16.mxu1 %v5745_v8 }
  0x4c   : > { %4666 = vmatpush3.bf16.msra.mxu0 %v5204_v60  ;;  %v5235_v60 = vld [vmem:[%s6665_s3 + $0x140] sm:$0xff]  }
  0x4d   : > { %4667 = vmatprep.subr.bf16.mxu0 %v5205_v0  ;;  %5072 = vmatpush3.bf16.msra.mxu1 %v5745_v8 }
  0x4e   : > { %4660 = vmatmul.mubr.bf16.gmra.mrb[12].mxu1 %v5724_v2  ;;  %5065 = vmatprep.subr.bf16.mxu1 %v5755_v10 }
  0x4f   : > { %4636 = vmatmul.mubr.bf16.gmra.mrb[4].mxu0 %v763_v3  ;;  %4803 = vmatprep.mubr.bf16.mxu1 %v5779_v16 }
  0x50   : > { %4668 = vmatpush3.bf16.msra.mxu0 %v5205_v0  ;;  %4679 = vmatprep.mubr.bf16.mxu0 %v1093_v4  ;;  %v1525_v0 = vpack.c.bf16 %v4152_v62, %v4151_v61  ;;  %v5239_v4 = vld [vmem:[%s6665_s3 + $0x158] sm:$0xff]  }
  0x51   : > { %4669 = vmatprep.subr.bf16.mxu0 %v5206_v5  ;;  %5073 = vmatpush3.bf16.msra.mxu1 %v5755_v10 }
  0x52   : > { %5066 = vmatprep.subr.bf16.mxu1 %v5765_v12 }
  0x54   : > { %4670 = vmatpush3.bf16.msra.mxu0 %v5206_v5  ;;  %v5241_v5 = vld [vmem:[%s6665_s3 + $0x160] sm:$0xff]  }
  0x55   : > { %4671 = vmatprep.subr.bf16.mxu0 %v5207_v7  ;;  %5074 = vmatpush3.bf16.msra.mxu1 %v5765_v12 }
  0x56   : > { %5067 = vmatprep.subr.bf16.mxu1 %v5785_v17 }
  0x58   : > { %4672 = vmatpush3.bf16.msra.mxu0 %v5207_v7  ;;  %v5243_v7 = vld [vmem:[%s6665_s3 + $0x168] sm:$0xff]  }
  0x59   : > { %4673 = vmatprep.subr.bf16.mxu0 %v5208_v9  ;;  %5075 = vmatpush3.bf16.msra.mxu1 %v5785_v17 }
  0x5a   : > { %5068 = vmatprep.subr.bf16.mxu1 %v5798_v20 }
  0x5c   : > { %4674 = vmatpush3.bf16.msra.mxu0 %v5208_v9  ;;  %v5245_v9 = vld [vmem:[%s6665_s3 + $0x170] sm:$0xff]  }
  0x5d   : > { %4675 = vmatprep.subr.bf16.mxu0 %v5209_v11  ;;  %5076 = vmatpush3.bf16.msra.mxu1 %v5798_v20 }
  0x5e   : > { %5069 = vmatprep.subr.bf16.mxu1 %v5812_v23 }
  0x60   : > { %4676 = vmatpush3.bf16.msra.mxu0 %v5209_v11  ;;  %v5247_v11 = vld [vmem:[%s6665_s3 + $0x178] sm:$0xff]  }
  0x61   : > { %4677 = vmatprep.subr.bf16.mxu0 %v5210_v13  ;;  %5077 = vmatpush3.bf16.msra.mxu1 %v5812_v23 }
  0x62   : > { %5070 = vmatprep.subr.bf16.mxu1 %v5825_v26 }
  0x64   : > { %4678 = vmatpush3.bf16.msra.mxu0 %v5210_v13 }
  0x65   : > { %4687 = vmatprep.subr.bf16.mxu0 %v5211_v18  ;;  %5078 = vmatpush3.bf16.msra.mxu1 %v5825_v26 }
  0x67   : > { %4680 = vmatmul.mubr.bf16.vlgmr.msra.gmra.mrb[0].mxu0 %v1094_v19 }
  0x68   : > { %4688 = vmatpush3.bf16.msra.mxu0 %v5211_v18  ;;  %4683 = vmatprep.mubr.bf16.mxu0 %v5802_v21 }
  0x69   : > { %4689 = vmatprep.subr.bf16.mxu0 %v5212_v22  ;;  %4804 = vmatmul.mubr.bf16.vlgmr.msra.gmra.mrb[16].mxu1 %v1807_v31 }
  0x6c   : > { %4690 = vmatpush3.bf16.msra.mxu0 %v5212_v22 }
  0x6d   : > { %4691 = vmatprep.subr.bf16.mxu0 %v5213_v24 }
  0x6f   : > { %4684 = vmatmul.mubr.bf16.gmra.mrb[4].mxu0 %v1096_v25 }
  0x70   : > { %4692 = vmatpush3.bf16.msra.mxu0 %v5213_v24  ;;  %4703 = vmatprep.mubr.bf16.mxu0 %v5648_v43  ;;  %v5226_v43 = vld [vmem:[%s6665_s3 + $0x1f8] sm:$0xff]  }
  0x71   : > { %4693 = vmatprep.subr.bf16.mxu0 %v5214_v29 }
  0x74   : > { %4694 = vmatpush3.bf16.msra.mxu0 %v5214_v29 }
  0x75   : > { %4695 = vmatprep.subr.bf16.mxu0 %v5215_v32 }
  0x78   : > { %4696 = vmatpush3.bf16.msra.mxu0 %v5215_v32 }
  0x79   : > { %4697 = vmatprep.subr.bf16.mxu0 %v5216_v33 }
  0x7c   : > { %4698 = vmatpush3.bf16.msra.mxu0 %v5216_v33 }
  0x7d   : > { %4699 = vmatprep.subr.bf16.mxu0 %v5217_v34 }
  0x80   : > { %4700 = vmatpush3.bf16.msra.mxu0 %v5217_v34 }
  0x81   : > { %4701 = vmatprep.subr.bf16.mxu0 %v5218_v35 }
  0x84   : > { %4702 = vmatpush3.bf16.msra.mxu0 %v5218_v35 }
  0x85   : > { %4711 = vmatprep.subr.bf16.mxu0 %v5219_v36 }
  0x87   : > { %4704 = vmatmul.mubr.bf16.vlgmr.msra.gmra.mrb[0].mxu0 %v5696_v57  ;;  %v4149_v57 = vld [vmem:[%s5581_s24 + $0xb0] sm:$0xff] }
  0x88   : > { %4712 = vmatpush3.bf16.msra.mxu0 %v5219_v36  ;;  %4707 = vmatprep.mubr.bf16.mxu0 %v5700_v58  ;;  %v4150_v58 = vld [vmem:[%s5581_s24 + $0xb8] sm:$0xff]  ;;  %v1665_v3 = vpack.c.bf16 %v4149_v57, %v4148_v49 }
  0x89   : > { %4713 = vmatprep.subr.bf16.mxu0 %v5220_v37  ;;  %v1524_v63 = vpack.c.bf16 %v4150_v58, %v4149_v57  ;;  %v1666_v13 = vpack.c.bf16 %v4151_v61, %v4150_v58 }
  0x8c   : > { %4714 = vmatpush3.bf16.msra.mxu0 %v5220_v37 }
  0x8d   : > { %4715 = vmatprep.subr.bf16.mxu0 %v5221_v38 }
  0x8f   : > { %4708 = vmatmul.mubr.bf16.gmra.mrb[4].mxu0 %v5724_v2  ;;  %v5237_v2 = vld [vmem:[%s6665_s3 + $0x150] sm:$0xff]  }
  0x90   : > { %4716 = vmatpush3.bf16.msra.mxu0 %v5221_v38  ;;  %4727 = vmatprep.mubr.bf16.mxu0 %v1094_v19  ;;  %v4066_v19 = vld [vmem:[%s6666_s4] ss:$0 sm:$0xff] }
  0x91   : > { %4717 = vmatprep.subr.bf16.mxu0 %v5222_v39 }
  0x94   : > { %4718 = vmatpush3.bf16.msra.mxu0 %v5222_v39 }
  0x95   : > { %4719 = vmatprep.subr.bf16.mxu0 %v5223_v40 }
  0x98   : > { %4720 = vmatpush3.bf16.msra.mxu0 %v5223_v40 }
  0x99   : > { %4721 = vmatprep.subr.bf16.mxu0 %v5224_v41 }
  0x9c   : > { %4722 = vmatpush3.bf16.msra.mxu0 %v5224_v41 }
  0x9d   : > { %4723 = vmatprep.subr.bf16.mxu0 %v5225_v42 }
  0xa0   : > { %4724 = vmatpush3.bf16.msra.mxu0 %v5225_v42 }
  0xa1   : > { %4725 = vmatprep.subr.bf16.mxu0 %v5226_v43 }
  0xa4   : > { %4726 = vmatpush3.bf16.msra.mxu0 %v5226_v43 }
  0xa5   : > { %4735 = vmatprep.subr.bf16.mxu0 %v5227_v44 }
  0xa7   : > { %4728 = vmatmul.mubr.bf16.vlgmr.msra.gmra.mrb[0].mxu0 %v5802_v21 }
  0xa8   : > { %4736 = vmatpush3.bf16.msra.mxu0 %v5227_v44  ;;  %4731 = vmatprep.mubr.bf16.mxu0 %v1096_v25 }
  0xa9   : > { %4737 = vmatprep.subr.bf16.mxu0 %v5228_v45 }
  0xac   : > { %4738 = vmatpush3.bf16.msra.mxu0 %v5228_v45 }
  0xad   : > { %4739 = vmatprep.subr.bf16.mxu0 %v5229_v47 }
  0xaf   : > { %4732 = vmatmul.mubr.bf16.gmra.mrb[4].mxu0 %v1373_v50 }
  0xb0   : > { %4740 = vmatpush3.bf16.msra.mxu0 %v5229_v47  ;;  %4751 = vmatprep.mubr.bf16.mxu0 %v1523_v51 }
  0xb1   : > { %4741 = vmatprep.subr.bf16.mxu0 %v5230_v52 }
  0xb4   : > { %4742 = vmatpush3.bf16.msra.mxu0 %v5230_v52 }
  0xb5   : > { %4743 = vmatprep.subr.bf16.mxu0 %v5231_v53 }
  0xb8   : > { %4744 = vmatpush3.bf16.msra.mxu0 %v5231_v53 }
  0xb9   : > { %4745 = vmatprep.subr.bf16.mxu0 %v5232_v54 }
  0xbc   : > { %4746 = vmatpush3.bf16.msra.mxu0 %v5232_v54 }
  0xbd   : > { %4747 = vmatprep.subr.bf16.mxu0 %v5233_v55 }
  0xc0   : > { %4748 = vmatpush3.bf16.msra.mxu0 %v5233_v55 }
  0xc1   : > { %4749 = vmatprep.subr.bf16.mxu0 %v5234_v56 }
  0xc4   : > { %4750 = vmatpush3.bf16.msra.mxu0 %v5234_v56 }
  0xc5   : > { %4759 = vmatprep.subr.bf16.mxu0 %v5235_v60 }
  0xc7   : > { %4752 = vmatmul.mubr.bf16.vlgmr.msra.gmra.mrb[0].mxu0 %v1524_v63 }
  0xc8   : > { %4760 = vmatpush3.bf16.msra.mxu0 %v5235_v60  ;;  %4755 = vmatprep.mubr.bf16.mxu0 %v1525_v0 }
  0xc9   : > { %4761 = vmatprep.subr.bf16.mxu0 %v5236_v1 }
  0xcc   : > { %4762 = vmatpush3.bf16.msra.mxu0 %v5236_v1 }
  0xcd   : > { %4763 = vmatprep.subr.bf16.mxu0 %v5237_v2 }
  0xcf   : > { %4756 = vmatmul.mubr.bf16.gmra.mrb[4].mxu0 %v5779_v16  ;;  %v1667_v16 = vpack.c.bf16 %v5771_v14, %v4152_v62  ;;  %v2005_v62 = vpop.xlane.xlu0 %2004 }
  0xd0   : > { %4764 = vmatpush3.bf16.msra.mxu0 %v5237_v2  ;;  %4775 = vmatprep.mubr.bf16.mxu0 %v1665_v3 }
  0xd1   : > { %4765 = vmatprep.subr.bf16.mxu0 %v5239_v4 }
  0xd4   : > { %4766 = vmatpush3.bf16.msra.mxu0 %v5239_v4 }
  0xd5   : > { %4767 = vmatprep.subr.bf16.mxu0 %v5241_v5 }
  0xd8   : > { %4768 = vmatpush3.bf16.msra.mxu0 %v5241_v5 }
  0xd9   : > { %4769 = vmatprep.subr.bf16.mxu0 %v5243_v7 }
  0xdc   : > { %4770 = vmatpush3.bf16.msra.mxu0 %v5243_v7  ;;  %v2007_v7 = vmul.f32 0.0078125, %v2005_v62 }
  0xdd   : > { %4771 = vmatprep.subr.bf16.mxu0 %v5245_v9 }
  0xe0   : > { %4772 = vmatpush3.bf16.msra.mxu0 %v5245_v9 }
  0xe1   : > { %4773 = vmatprep.subr.bf16.mxu0 %v5247_v11 }
  0xe4   : > { %4774 = vmatpush3.bf16.msra.mxu0 %v5247_v11 }
  0xe5   : > { %4783 = vmatprep.subr.bf16.mxu0 %v5735_v6 }
  0xe7   : > { %4776 = vmatmul.mubr.bf16.vlgmr.msra.gmra.mrb[0].mxu0 %v1666_v13 }
  0xe8   : > { %4784 = vmatpush3.bf16.msra.mxu0 %v5735_v6  ;;  %4779 = vmatprep.mubr.bf16.mxu0 %v1667_v16 }
  0xe9   : > { %4785 = vmatprep.subr.bf16.mxu0 %v5745_v8 }
  0xec   : > { %4786 = vmatpush3.bf16.msra.mxu0 %v5745_v8 }
  0xed   : > { %4787 = vmatprep.subr.bf16.mxu0 %v5755_v10 }
  0xef   : > { %4780 = vmatmul.mubr.bf16.gmra.mrb[4].mxu0 %v1668_v30 }
  0xf0   : > { %4788 = vmatpush3.bf16.msra.mxu0 %v5755_v10  ;;  %4799 = vmatprep.mubr.bf16.mxu0 %v1524_v63 }
  0xf1   : > { %4789 = vmatprep.subr.bf16.mxu0 %v5765_v12 }
  0xf4   : > { %4790 = vmatpush3.bf16.msra.mxu0 %v5765_v12 }
  0xf5   : > { %4791 = vmatprep.subr.bf16.mxu0 %v5785_v17 }
  0xf8   : > { %4792 = vmatpush3.bf16.msra.mxu0 %v5785_v17 }
  0xf9   : > { %v5951_v6 = vpop.f32.mrb[0].mxu1  ;;  %4793 = vmatprep.subr.bf16.mxu0 %v5798_v20 }
  0xfa   : > { %v5954_v8 = vpop.f32.mrb[1].mxu1 }
  0xfb   : > { %v5956_v14 = vpop.f32.mrb[2].mxu1 }
  0xfc   : > { %4794 = vmatpush3.bf16.msra.mxu0 %v5798_v20  ;;  %v5959_v10 = vpop.f32.mrb[3].mxu1 }
  0xfd   : > { %4795 = vmatprep.subr.bf16.mxu0 %v5812_v23 }
 0x100   : > { %4796 = vmatpush3.bf16.msra.mxu0 %v5812_v23 }
 0x101   : > { %4797 = vmatprep.subr.bf16.mxu0 %v5825_v26  ;;  %v5964_v12 = vpop.f32.mrb[4].mxu1 }
 0x102   : > { %v5966_v15 = vpop.f32.mrb[5].mxu1 }
 0x103   : > { %v5968_v17 = vpop.f32.mrb[6].mxu1 }
 0x104   : > { %4798 = vmatpush3.bf16.msra.mxu0 %v5825_v26  ;;  %v5971_v18 = vpop.f32.mrb[7].mxu1 }
 0x107   : > { %4800 = vmatmul.mubr.bf16.vlgmr.msra.gmra.mrb[0].mxu0 %v1525_v0 }
 0x119   : > { %v4657_v20 = vpop.f32.mrb[8].mxu1 }
 0x11a   : > { %v1031_v21 = vadd.f32 %v4657_v20, %v4066_v19  ;;  %v1022_v22 = vpop.f32.mrb[9].mxu1 }
 0x11b   : > { %v1023_v23 = vadd.f32 %v4066_v19, %v1022_v22  ;;  %v4658_v24 = vpop.f32.mrb[10].mxu1 }
 0x11c   : > { %v1063_v25 = vmul.f32 0.70710677, %v1031_v21  ;;  %v1034_v27 = vadd.f32 %v4658_v24, %v4066_v19  ;;  %v1025_v28 = vpop.f32.mrb[11].mxu1  ;;  %v1055_v58 = vmul.f32 0.5, %v1031_v21  ;;  %v5995_v21 = vsub.f32 %v5702_v59, %v2007_v7 }
 0x11d   : > { %v1061_v29 = vmul.f32 0.70710677, %v1023_v23  ;;  %v1026_v30 = vadd.f32 %v4066_v19, %v1025_v28  ;;  %v1053_v47 = vmul.f32 0.5, %v1023_v23 }
 0x11e   : > { %5259 = verf.f32 %v1063_v25  ;;  %v1064_v31 = vmul.f32 0.70710677, %v1034_v27  ;;  %v1056_v55 = vmul.f32 0.5, %v1034_v27  ;;  %v2009_v24 = vmul.f32 %v5995_v21, %v5995_v21 }
 0x11f   : > { %5261 = verf.f32 %v1061_v29  ;;  %v1062_v26 = vmul.f32 0.70710677, %v1026_v30  ;;  %v1054_v51 = vmul.f32 0.5, %v1026_v30 }
 0x120   : > { %5263 = verf.f32 %v1064_v31 }
 0x121   : > { %5265 = verf.f32 %v1062_v26  ;;  %v4661_v32 = vpop.f32.mrb[12].mxu1 }
 0x122   : > { %v1047_v33 = vadd.f32 %v4661_v32, %v4066_v19  ;;  %v1038_v34 = vpop.f32.mrb[13].mxu1 }
 0x123   : > { %v1039_v35 = vadd.f32 %v4066_v19, %v1038_v34  ;;  %v4662_v36 = vpop.f32.mrb[14].mxu1 }
 0x124   : > { %v1067_v37 = vmul.f32 0.70710677, %v1047_v33  ;;  %v1050_v38 = vadd.f32 %v4662_v36, %v4066_v19  ;;  %v1041_v39 = vpop.f32.mrb[15].mxu1 }
 0x125   : > { %v1065_v40 = vmul.f32 0.70710677, %v1039_v35  ;;  %v1042_v41 = vadd.f32 %v4066_v19, %v1041_v39  ;;  %v1057_v3 = vmul.f32 0.5, %v1039_v35  ;;  %v1059_v19 = vmul.f32 0.5, %v1047_v33 }
 0x126   : > { %5267 = verf.f32 %v1067_v37  ;;  %v1068_v42 = vmul.f32 0.70710677, %v1050_v38  ;;  %v1060_v20 = vmul.f32 0.5, %v1050_v38 }
 0x127   : > { %5269 = verf.f32 %v1065_v40  ;;  %v1066_v43 = vmul.f32 0.70710677, %v1042_v41  ;;  %v1058_v4 = vmul.f32 0.5, %v1042_v41 }
 0x128   : > { %v5260_v44 = vpop.eup %5259  ;;  %5271 = verf.f32 %v1068_v42 }
 0x129   : > { %v5262_v45 = vpop.eup %5261  ;;  %5273 = verf.f32 %v1066_v43  ;;  %v1079_v54 = vadd.f32 1.0, %v5260_v44 }
 0x12a   : > { %v5264_v46 = vpop.eup %5263  ;;  %v1077_v48 = vadd.f32 1.0, %v5262_v45 }
 0x12b   : > { %v5266_v49 = vpop.eup %5265  ;;  %v1080_v50 = vadd.f32 1.0, %v5264_v46  ;;  %v5985_v1 = vmul.f32 %v1079_v54, %v1055_v58 }
 0x12c   : > { %v1078_v52 = vadd.f32 1.0, %v5266_v49  ;;  %v5976_v53 = vmul.f32 %v1077_v48, %v1053_v47 }
 0x12d   : > { %v5982_v60 = vmul.f32 %v1080_v50, %v1056_v55 }
 0x12e   : > { %2032 = vadd.xlane.f32.xlu0 %v5976_v53  ;;  %v5979_v56 = vmul.f32 %v1078_v52, %v1054_v51 }
 0x130   : > { %v5268_v57 = vpop.eup %5267  ;;  %2034 = vadd.xlane.f32.xlu1 %v5979_v56 }
 0x131   : > { %v5270_v61 = vpop.eup %5269  ;;  %v1083_v9 = vadd.f32 1.0, %v5268_v57 }
 0x132   : > { %v5272_v63 = vpop.eup %5271  ;;  %v1081_v0 = vadd.f32 1.0, %v5270_v61  ;;  %2038 = vadd.xlane.f32.xlu0 %v5982_v60 }
 0x133   : > { %v5274_v2 = vpop.eup %5273  ;;  %v1084_v11 = vadd.f32 1.0, %v5272_v63  ;;  %v5997_v22 = vmul.f32 %v1083_v9, %v1059_v19 }
 0x134   : > { %v1082_v5 = vadd.f32 1.0, %v5274_v2  ;;  %2036 = vadd.xlane.f32.xlu1 %v5985_v1  ;;  %v5988_v13 = vmul.f32 %v1081_v0, %v1057_v3 }
 0x135   : > { %v5999_v23 = vmul.f32 %v1084_v11, %v1060_v20 }
 0x136   : > { %v5990_v16 = vmul.f32 %v1082_v5, %v1058_v4 }
 0x138   : > { %2040 = vadd.xlane.f32.xlu1 %v5988_v13  ;;  %2042 = vadd.xlane.f32.xlu0 %v5990_v16 }
 0x13c   : > { %2044 = vadd.xlane.f32.xlu1 %v5997_v22  ;;  %2046 = vadd.xlane.f32.xlu0 %v5999_v23  ;;  %v4805_v25 = vpop.f32.mrb[16].mxu1 }
 0x13d   : > { %v1923_v27 = vpop.f32.mrb[17].mxu1 }
 0x13e   : > { %v4806_v28 = vpop.f32.mrb[18].mxu1 }
 0x13f   : > { %v1926_v29 = vpop.f32.mrb[19].mxu1 }
 0x140   : > { %2010 = vadd.xlane.f32.xlu1 %v2009_v24 }
 0x1bb   : > { %v2033_v30 = vpop.xlane.xlu0 %2032 }
 0x1bc   : > { %v2048_v31 = vmul.f32 0.0078125, %v2033_v30  ;;  %v4230_v30 = vld [vmem:[%s6672_s10] ss:$0 sm:$0xff] }
 0x1bd   : > { %v2035_v59 = vpop.xlane.xlu1 %2034 }
 0x1be   : > { %v2049_v26 = vmul.f32 0.0078125, %v2035_v59  ;;  %v6006_v32 = vsub.f32 %v5976_v53, %v2048_v31 }
 0x1bf   : > { %v2039_v33 = vpop.xlane.xlu0 %2038 }
 0x1c0   : > { %v2051_v34 = vmul.f32 0.0078125, %v2039_v33  ;;  %v2064_v35 = vmul.f32 %v6006_v32, %v6006_v32  ;;  %v6011_v36 = vsub.f32 %v5979_v56, %v2049_v26 }
 0x1c1   : > { %v2037_v37 = vpop.xlane.xlu1 %2036 }
 0x1c2   : > { %v2050_v38 = vmul.f32 0.0078125, %v2037_v37  ;;  %v4781_v39 = vpop.f32.mrb[4].mxu0  ;;  %2072 = vadd.xlane.f32.xlu0 %v2064_v35  ;;  %v2065_v40 = vmul.f32 %v6011_v36, %v6011_v36  ;;  %v6016_v41 = vsub.f32 %v5982_v60, %v2051_v34 }
 0x1c3   : > { %v5083_v42 = vadd.f32 %v4781_v39, %v5964_v12  ;;  %v1784_v43 = vpop.f32.mrb[5].mxu0 }
 0x1c4   : > { %v5085_v44 = vadd.f32 %v1784_v43, %v5966_v15  ;;  %v4782_v45 = vpop.f32.mrb[6].mxu0  ;;  %2074 = vadd.xlane.f32.xlu1 %v2065_v40  ;;  %v6021_v46 = vsub.f32 %v5985_v1, %v2050_v38  ;;  %v2067_v51 = vmul.f32 %v6016_v41, %v6016_v41 }
 0x1c5   : > { %v5087_v47 = vadd.f32 %v4782_v45, %v5968_v17  ;;  %v6024_v48 = vadd.f32 %v5083_v42, %v4805_v25  ;;  %v1787_v49 = vpop.f32.mrb[7].mxu0  ;;  %v2041_v50 = vpop.xlane.xlu1 %2040 }
 0x1c6   : > { %v6028_v52 = vadd.f32 %v5085_v44, %v1923_v27  ;;  %v5089_v12 = vadd.f32 %v1787_v49, %v5971_v18  ;;  %v2052_v54 = vmul.f32 0.0078125, %v2041_v50  ;;  %v2043_v15 = vpop.xlane.xlu0 %2042  ;;  %v2066_v55 = vmul.f32 %v6021_v46, %v6021_v46 }
 0x1c7   : > { %v6033_v57 = vadd.f32 %v5087_v47, %v4806_v28  ;;  %v2053_v58 = vmul.f32 0.0078125, %v2043_v15 }
 0x1c8   : > { %v6035_v17 = vadd.f32 %v5089_v12, %v1926_v29  ;;  %2076 = vadd.xlane.f32.xlu0 %v2066_v55  ;;  %2078 = vadd.xlane.f32.xlu1 %v2067_v51  ;;  %v6038_v61 = vsub.f32 %v5988_v13, %v2052_v54 }
 0x1c9   : > { %v2045_v62 = vpop.xlane.xlu1 %2044  ;;  %v6041_v63 = vsub.f32 %v5990_v16, %v2053_v58  ;;  %v4232_v58 = vld [vmem:[%s6668_s6] ss:$0 sm:$0xff] }
 0x1ca   : > { %v2054_v18 = vmul.f32 0.0078125, %v2045_v62  ;;  %v2047_v0 = vpop.xlane.xlu0 %2046  ;;  %v2068_v3 = vmul.f32 %v6038_v61, %v6038_v61 }
 0x1cb   : > { %v2055_v2 = vmul.f32 0.0078125, %v2047_v0  ;;  %v2069_v4 = vmul.f32 %v6041_v63, %v6041_v63 }
 0x1cc   : > { %v6048_v7 = vsub.f32 %v5997_v22, %v2054_v18  ;;  %2080 = vadd.xlane.f32.xlu0 %v2068_v3 }
 0x1cd   : > { %v2011_v5 = vpop.xlane.xlu1 %2010  ;;  %v6051_v9 = vsub.f32 %v5999_v23, %v2055_v2  ;;  %2082 = vadd.xlane.f32.xlu1 %v2069_v4 }
 0x1ce   : > { %v2012_v11 = vmul.f32 0.0078125, %v2011_v5  ;;  %v2070_v19 = vmul.f32 %v6048_v7, %v6048_v7  ;;  %v4233_v5 = vld [vmem:[%s6669_s7] ss:$0 sm:$0xff] }
 0x1cf   : > { %v2071_v20 = vmul.f32 %v6051_v9, %v6051_v9 }
 0x1d0   : > { %v2013_v24 = vadd.f32 1e-05, %v2012_v11  ;;  %2084 = vadd.xlane.f32.xlu0 %v2070_v19 }
 0x1d1   : > { %2086 = vadd.xlane.f32.xlu1 %v2071_v20 }
 0x1d2   : > { %5275 = vrsqrt.f32 %v2013_v24 }
 0x1da   : > { %v4801_v25 = vpop.f32.mrb[0].mxu0 }
 0x1db   : > { %v6058_v27 = vadd.f32 %v4801_v25, %v5951_v6  ;;  %v1907_v28 = vpop.f32.mrb[1].mxu0  ;;  %v4231_v6 = vld [vmem:[%s6673_s11] ss:$0 sm:$0xff] }
 0x1dc   : > { %v5276_v29 = vpop.eup %5275  ;;  %v6064_v31 = vadd.f32 %v1907_v28, %v5954_v8  ;;  %v4802_v59 = vpop.f32.mrb[2].mxu0 }
 0x1dd   : > { %v2015_v26 = vmul.f32 %v5276_v29, %v5995_v21  ;;  %v6068_v33 = vadd.f32 %v4802_v59, %v5956_v14  ;;  %v1910_v34 = vpop.f32.mrb[3].mxu0 }
 0x1de   : > { %v6074_v35 = vadd.f32 %v1910_v34, %v5959_v10 }
 0x1df   : > { %v2022_v37 = vmul.f32 %v4230_v30, %v2015_v26 }
 0x1e1   : > { %v6076_v38 = vadd.f32 %v4231_v6, %v2022_v37 }
 0x1e3   : > { %4807 = vmatprep.subr.mxu1 %v6076_v38 }
 0x1e4   : > { %4808 = vmatpush3.xpose.msra.mxu1 %v6076_v38 }
 0x1e5   : > { %4821 = vmatprep.subr.mxu1 %v6076_v38 }
 0x24f   : > { %v2073_v8 = vpop.xlane.xlu0 %2072 }
 0x250   : > { %v2088_v14 = vmul.f32 0.0078125, %v2073_v8 }
 0x251   : > { %v2075_v21 = vpop.xlane.xlu1 %2074 }
 0x252   : > { %v2096_v39 = vadd.f32 1e-05, %v2088_v14  ;;  %v2089_v40 = vmul.f32 0.0078125, %v2075_v21 }
 0x254   : > { %5277 = vrsqrt.f32 %v2096_v39  ;;  %v2097_v42 = vadd.f32 1e-05, %v2089_v40 }
 0x255   : > { %v2079_v43 = vpop.xlane.xlu1 %2078  ;;  %v2077_v44 = vpop.xlane.xlu0 %2076 }
 0x256   : > { %5279 = vrsqrt.f32 %v2097_v42  ;;  %v2091_v10 = vmul.f32 0.0078125, %v2079_v43  ;;  %v2090_v45 = vmul.f32 0.0078125, %v2077_v44 }
 0x258   : > { %v2099_v47 = vadd.f32 1e-05, %v2091_v10  ;;  %v2098_v49 = vadd.f32 1e-05, %v2090_v45 }
 0x259   : > { %v2081_v50 = vpop.xlane.xlu0 %2080 }
 0x25a   : > { %5281 = vrsqrt.f32 %v2099_v47  ;;  %v2083_v51 = vpop.xlane.xlu1 %2082  ;;  %v2092_v12 = vmul.f32 0.0078125, %v2081_v50 }
 0x25b   : > { %5283 = vrsqrt.f32 %v2098_v49  ;;  %v2093_v54 = vmul.f32 0.0078125, %v2083_v51 }
 0x25c   : > { %v2100_v55 = vadd.f32 1e-05, %v2092_v12 }
 0x25d   : > { %v2101_v62 = vadd.f32 1e-05, %v2093_v54  ;;  %v2085_v18 = vpop.xlane.xlu0 %2084 }
 0x25e   : > { %v5278_v15 = vpop.eup %5277  ;;  %5285 = vrsqrt.f32 %v2100_v55  ;;  %v2087_v3 = vpop.xlane.xlu1 %2086  ;;  %v2094_v4 = vmul.f32 0.0078125, %v2085_v18 }
 0x25f   : > { %v2112_v0 = vmul.f32 %v5278_v15, %v6006_v32  ;;  %5287 = vrsqrt.f32 %v2101_v62  ;;  %v2095_v11 = vmul.f32 0.0078125, %v2087_v3 }
 0x260   : > { %v5280_v2 = vpop.eup %5279  ;;  %v2102_v24 = vadd.f32 1e-05, %v2094_v4 }
 0x261   : > { %v2126_v19 = vmul.f32 %v4232_v58, %v2112_v0  ;;  %v2113_v20 = vmul.f32 %v5280_v2, %v6011_v36  ;;  %v2103_v25 = vadd.f32 1e-05, %v2095_v11 }
 0x262   : > { %5289 = vrsqrt.f32 %v2102_v24 }
 0x263   : > { %v2140_v28 = vadd.f32 %v4233_v5, %v2126_v19  ;;  %v2127_v29 = vmul.f32 %v4232_v58, %v2113_v20  ;;  %5291 = vrsqrt.f32 %v2103_v25 }
 0x264   : > { %v5282_v30 = vpop.eup %5281 }
 0x265   : > { %v5284_v32 = vpop.eup %5283  ;;  %4809 = vmatprep.mubr.f32.mxu1 %v2140_v28  ;;  %v2141_v59 = vadd.f32 %v4233_v5, %v2127_v29  ;;  %v2115_v26 = vmul.f32 %v5282_v30, %v6016_v41 }
 0x266   : > { %v2114_v34 = vmul.f32 %v5284_v32, %v6021_v46 }
 0x267   : > { %4810 = vmatmul.mubr.f32.vlgmr.msra.gmra.mrb[20].mxu1 %v2141_v59  ;;  %v2129_v6 = vmul.f32 %v4232_v58, %v2115_v26 }
 0x268   : > { %4822 = vmatpush3.msra.mxu1 %v6076_v38  ;;  %v2128_v37 = vmul.f32 %v4232_v58, %v2114_v34  ;;  %v5286_v8 = vpop.eup %5285 }
 0x269   : > { %4835 = vmatprep.subr.mxu1 %v6076_v38  ;;  %v2143_v36 = vadd.f32 %v4233_v5, %v2129_v6  ;;  %v5288_v21 = vpop.eup %5287  ;;  %v2116_v39 = vmul.f32 %v5286_v8, %v6038_v61 }
 0x26a   : > { %v2142_v14 = vadd.f32 %v4233_v5, %v2128_v37  ;;  %v2117_v40 = vmul.f32 %v5288_v21, %v6041_v63  ;;  %v4229_v63 = vld [vmem:[%s6667_s5] ss:$0 sm:$0xff] }
 0x26b   : > { %v2130_v41 = vmul.f32 %v4232_v58, %v2116_v39  ;;  %v1954_v12 = vadd.f32 %v6074_v35, %v4229_v63  ;;  %v1953_v54 = vadd.f32 %v6064_v31, %v4229_v63  ;;  %v6106_v55 = vadd.f32 %v6058_v27, %v4229_v63 }
 0x26c   : > { %4812 = vmatprep.mubr.f32.mxu1 %v2142_v14  ;;  %v5290_v42 = vpop.eup %5289  ;;  %v2131_v46 = vmul.f32 %v4232_v58, %v2117_v40  ;;  %v6115_v31 = vadd.f32 %v6035_v17, %v4229_v63  ;;  %v6121_v2 = vadd.f32 %v6028_v52, %v4229_v63  ;;  %v6127_v17 = vadd.f32 %v6033_v57, %v4229_v63 }
 0x26d   : > { %4813 = vmatmul.mubr.f32.gmra.mrb[22].mxu1 %v2143_v36  ;;  %v5292_v43 = vpop.eup %5291  ;;  %v2144_v44 = vadd.f32 %v4233_v5, %v2130_v41  ;;  %v2118_v10 = vmul.f32 %v5290_v42, %v6048_v7  ;;  %v6103_v7 = vadd.f32 %v6068_v33, %v4229_v63  ;;  %v1971_v3 = vmul.f32 0.70710677, %v6106_v55 }
 0x26e   : > { %v2145_v45 = vadd.f32 %v4233_v5, %v2131_v46  ;;  %v2119_v47 = vmul.f32 %v5292_v43, %v6051_v9  ;;  %v1970_v9 = vmul.f32 0.70710677, %v1954_v12  ;;  %v1974_v19 = vmul.f32 0.70710677, %v6115_v31 }
 0x26f   : > { %4815 = vmatprep.mubr.f32.mxu1 %v2144_v44  ;;  %v2132_v49 = vmul.f32 %v4232_v58, %v2118_v10  ;;  %v1972_v33 = vmul.f32 0.70710677, %v6103_v7  ;;  %v1959_v24 = vadd.f32 %v6024_v48, %v4229_v63  ;;  %v1973_v52 = vmul.f32 0.70710677, %v6121_v2 }
 0x270   : > { %v2133_v50 = vmul.f32 %v4232_v58, %v2119_v47  ;;  %v1969_v58 = vmul.f32 0.70710677, %v1953_v54  ;;  %5293 = verf.f32 %v1970_v9  ;;  %v1976_v57 = vmul.f32 0.70710677, %v6127_v17 }
 0x271   : > { %4816 = vmatmul.mubr.f32.gmra.mrb[24].mxu1 %v2145_v45  ;;  %v2146_v51 = vadd.f32 %v4233_v5, %v2132_v49  ;;  %v1975_v59 = vmul.f32 0.70710677, %v1959_v24  ;;  %v1962_v43 = vmul.f32 0.5, %v1954_v12  ;;  %v1961_v10 = vmul.f32 0.5, %v1953_v54 }
 0x272   : > { %v2147_v61 = vadd.f32 %v4233_v5, %v2133_v50  ;;  %5295 = verf.f32 %v1969_v58  ;;  %v1964_v63 = vmul.f32 0.5, %v6103_v7  ;;  %v1963_v12 = vmul.f32 0.5, %v6106_v55 }
 0x273   : > { %4818 = vmatprep.mubr.f32.mxu1 %v2146_v51  ;;  %5297 = verf.f32 %v1972_v33  ;;  %v1966_v33 = vmul.f32 0.5, %v6115_v31  ;;  %v1965_v7 = vmul.f32 0.5, %v6121_v2 }
 0x274   : > { %5299 = verf.f32 %v1971_v3 }
 0x275   : > { %4819 = vmatmul.mubr.f32.gmra.mrb[26].mxu1 %v2147_v61  ;;  %5301 = verf.f32 %v1974_v19  ;;  %v1967_v19 = vmul.f32 0.5, %v1959_v24 }
 0x276   : > { %5303 = verf.f32 %v1973_v52 }
 0x277   : > { %5305 = verf.f32 %v1976_v57 }
 0x278   : > { %5307 = verf.f32 %v1975_v59 }
 0x27a   : > { %v5294_v26 = vpop.eup %5293 }
 0x27b   : > { %v1986_v39 = vadd.f32 1.0, %v5294_v26 }
 0x27c   : > { %v5296_v6 = vpop.eup %5295 }
 0x27d   : > { %v5298_v40 = vpop.eup %5297  ;;  %v1985_v42 = vadd.f32 1.0, %v5296_v6  ;;  %v6155_v45 = vmul.f32 %v1986_v39, %v1962_v43 }
 0x27e   : > { %v5300_v46 = vpop.eup %5299  ;;  %v1988_v47 = vadd.f32 1.0, %v5298_v40 }
 0x27f   : > { %v5302_v49 = vpop.eup %5301  ;;  %v6157_v50 = vmul.f32 %v1985_v42, %v1961_v10  ;;  %v1987_v51 = vadd.f32 1.0, %v5300_v46 }
 0x280   : > { %v5304_v61 = vpop.eup %5303  ;;  %v6163_v9 = vmul.f32 %v1988_v47, %v1964_v63  ;;  %v1990_v54 = vadd.f32 1.0, %v5302_v49 }
 0x281   : > { %v6165_v58 = vmul.f32 %v1987_v51, %v1963_v12 }
 0x33a   : > { %v4811_v15 = vpop.f32.mrb[20].mxu1 }
 0x33b   : > { %v6108_v62 = vmul.f32 0.088388346, %v4811_v15  ;;  %v2214_v18 = vpop.f32.mrb[21].mxu1  ;;  %v5306_v15 = vpop.eup %5305 }
 0x33c   : > { %v6110_v0 = vmul.f32 0.088388346, %v2214_v18  ;;  %v1989_v18 = vadd.f32 1.0, %v5304_v61  ;;  %v1992_v55 = vadd.f32 1.0, %v5306_v15 }
 0x33d   : > { %v2265_v35 = vsel %vm2261_vm0, %v6108_v62, -inf }
 0x33e   : > { %2266 = vmax.xlane.f32.xlu1 %v2265_v35  ;;  %v2262_v27 = vsel %vm2261_vm0, %v6110_v0, -inf  ;;  %v5308_v35 = vpop.eup %5307  ;;  %v6173_v3 = vmul.f32 %v1989_v18, %v1965_v7 }
 0x33f   : > { %2263 = vmax.xlane.f32.xlu0 %v2262_v27  ;;  %v6171_v27 = vmul.f32 %v1990_v54, %v1966_v33 }
 0x340   : > { %v4814_v4 = vpop.f32.mrb[22].mxu1 }
 0x341   : > { %v6124_v5 = vmul.f32 0.088388346, %v4814_v4  ;;  %v2224_v11 = vpop.f32.mrb[23].mxu1  ;;  %v1991_v4 = vadd.f32 1.0, %v5308_v35 }
 0x342   : > { %v6130_v20 = vmul.f32 0.088388346, %v2224_v11  ;;  %v1968_v11 = vmul.f32 0.5, %v6127_v17 }
 0x343   : > { %v2271_v25 = vsel %vm2261_vm0, %v6124_v5, -inf  ;;  %v6180_v52 = vmul.f32 %v1991_v4, %v1967_v19 }
 0x344   : > { %2272 = vmax.xlane.f32.xlu1 %v2271_v25  ;;  %v2268_v28 = vsel %vm2261_vm0, %v6130_v20, -inf  ;;  %v4817_v29 = vpop.f32.mrb[24].mxu1  ;;  %v6178_v31 = vmul.f32 %v1992_v55, %v1968_v11 }
 0x345   : > { %2269 = vmax.xlane.f32.xlu0 %v2268_v28  ;;  %v6139_v30 = vmul.f32 0.088388346, %v4817_v29  ;;  %v2234_v32 = vpop.f32.mrb[25].mxu1 }
 0x346   : > { %v6141_v48 = vmul.f32 0.088388346, %v2234_v32 }
 0x347   : > { %v2277_v34 = vsel %vm2261_vm0, %v6139_v30, -inf }
 0x348   : > { %2278 = vmax.xlane.f32.xlu1 %v2277_v34  ;;  %v4820_v37 = vpop.f32.mrb[26].mxu1  ;;  %v2274_v36 = vsel %vm2261_vm0, %v6141_v48, -inf }
 0x349   : > { %v6147_v8 = vmul.f32 0.088388346, %v4820_v37  ;;  %2275 = vmax.xlane.f32.xlu0 %v2274_v36  ;;  %v2244_v14 = vpop.f32.mrb[27].mxu1 }
 0x34a   : > { %v6149_v21 = vmul.f32 0.088388346, %v2244_v14 }
 0x34b   : > { %v2283_v41 = vsel %vm2261_vm0, %v6147_v8, -inf }
 0x34c   : > { %2284 = vmax.xlane.f32.xlu1 %v2283_v41  ;;  %v2280_v44 = vsel %vm2261_vm0, %v6149_v21, -inf }
 0x34d   : > { %2281 = vmax.xlane.f32.xlu0 %v2280_v44 }
 0x350   : > { %2491 = vadd.xlane.f32.xlu1 %v6155_v45 }
 0x351   : > { %2489 = vadd.xlane.f32.xlu0 %v6157_v50 }
 0x354   : > { %2495 = vadd.xlane.f32.xlu1 %v6163_v9 }
 0x355   : > { %2493 = vadd.xlane.f32.xlu0 %v6165_v58 }
 0x358   : > { %2499 = vadd.xlane.f32.xlu1 %v6171_v27 }
 0x359   : > { %2497 = vadd.xlane.f32.xlu0 %v6173_v3 }
 0x35c   : > { %2503 = vadd.xlane.f32.xlu1 %v6178_v31 }
 0x35d   : > { %2501 = vadd.xlane.f32.xlu0 %v6180_v52 }
 0x3cb   : > { %v2267_v2 = vpop.xlane.xlu1 %2266 }
 0x3cc   : > { %v2264_v25 = vpop.xlane.xlu0 %2263  ;;  %v2287_v6 = vsub.f32 %v6108_v62, %v2267_v2 }
 0x3cd   : > { %v2286_v28 = vsub.f32 %v6110_v0, %v2264_v25 }
 0x3cf   : > { %v2294_v29 = vmul.f32 1.442695, %v2286_v28 }
 0x3d1   : > { %5309 = vpow2.f32 %v2294_v29  ;;  %v2273_v17 = vpop.xlane.xlu1 %2272 }
 0x3d2   : > { %v2270_v57 = vpop.xlane.xlu0 %2269  ;;  %v2289_v42 = vsub.f32 %v6124_v5, %v2273_v17 }
 0x3d3   : > { %v2288_v24 = vsub.f32 %v6130_v20, %v2270_v57  ;;  %v2296_v20 = vmul.f32 1.442695, %v2287_v6 }
 0x3d4   : > { %v2300_v44 = vmul.f32 1.442695, %v2289_v42 }
 0x3d5   : > { %v2298_v32 = vmul.f32 1.442695, %v2288_v24  ;;  %v2279_v59 = vpop.xlane.xlu1 %2278 }
 0x3d6   : > { %v2291_v26 = vsub.f32 %v6139_v30, %v2279_v59  ;;  %v2276_v34 = vpop.xlane.xlu0 %2275 }
 0x3d7   : > { %5311 = vpow2.f32 %v2298_v32  ;;  %v2290_v37 = vsub.f32 %v6141_v48, %v2276_v34 }
 0x3d8   : > { %v2304_v36 = vmul.f32 1.442695, %v2291_v26 }
 0x3d9   : > { %v2302_v14 = vmul.f32 1.442695, %v2290_v37  ;;  %v2285_v39 = vpop.xlane.xlu1 %2284 }
 0x3da   : > { %5313 = vpow2.f32 %v2304_v36  ;;  %v2293_v40 = vsub.f32 %v6147_v8, %v2285_v39  ;;  %v2282_v41 = vpop.xlane.xlu0 %2281 }
 0x3db   : > { %v6189_v0 = vpop.eup %5309  ;;  %5315 = vpow2.f32 %v2302_v14  ;;  %v2292_v62 = vsub.f32 %v6149_v21, %v2282_v41 }
 0x3dc   : > { %v2310_v30 = vsel %vm2261_vm0, %v6189_v0, 0.0  ;;  %v2308_v46 = vmul.f32 1.442695, %v2293_v40  ;;  %5317 = vpow2.f32 %v2296_v20 }
 0x3dd   : > { %2311 = vadd.xlane.f32.xlu0 %v2310_v30  ;;  %v2492_v48 = vpop.xlane.xlu1 %2491  ;;  %v2306_v8 = vmul.f32 1.442695, %v2292_v62 }
 0x3de   : > { %v2490_v43 = vpop.xlane.xlu0 %2489  ;;  %v2506_v10 = vmul.f32 0.0078125, %v2492_v48  ;;  %5319 = vpow2.f32 %v2308_v46 }
 0x3df   : > { %v2505_v47 = vmul.f32 0.0078125, %v2490_v43  ;;  %5321 = vpow2.f32 %v2300_v44 }
 0x3e0   : > { %v6204_v21 = vsub.f32 %v6155_v45, %v2506_v10  ;;  %5323 = vpow2.f32 %v2306_v8 }
 0x3e1   : > { %v6196_v49 = vpop.eup %5311  ;;  %v6199_v5 = vsub.f32 %v6157_v50, %v2505_v47  ;;  %v2496_v33 = vpop.xlane.xlu1 %2495 }
 0x3e2   : > { %v2316_v51 = vsel %vm2261_vm0, %v6196_v49, 0.0  ;;  %v2494_v61 = vpop.xlane.xlu0 %2493  ;;  %v2522_v35 = vmul.f32 %v6204_v21, %v6204_v21  ;;  %v2508_v24 = vmul.f32 0.0078125, %v2496_v33 }
 0x3e3   : > { %2317 = vadd.xlane.f32.xlu0 %v2316_v51  ;;  %v2521_v63 = vmul.f32 %v6199_v5, %v6199_v5  ;;  %v2507_v11 = vmul.f32 0.0078125, %v2494_v61 }
 0x3e4   : > { %v6208_v12 = vpop.eup %5313  ;;  %v6241_v37 = vsub.f32 %v6163_v9, %v2508_v24 }
 0x3e5   : > { %2529 = vadd.xlane.f32.xlu1 %v2521_v63  ;;  %v2325_v54 = vsel %vm2261_vm0, %v6208_v12, 0.0  ;;  %v6212_v15 = vpop.eup %5315  ;;  %v2500_v57 = vpop.xlane.xlu1 %2499  ;;  %v6231_v32 = vsub.f32 %v6165_v58, %v2507_v11 }
 0x3e6   : > { %v2498_v18 = vpop.xlane.xlu0 %2497  ;;  %v6216_v7 = vpop.eup %5317  ;;  %v2322_v55 = vsel %vm2261_vm0, %v6212_v15, 0.0  ;;  %v2510_v36 = vmul.f32 0.0078125, %v2500_v57  ;;  %v2524_v30 = vmul.f32 %v6241_v37, %v6241_v37 }
 0x3e7   : > { %2326 = vadd.xlane.f32.xlu0 %v2325_v54  ;;  %v2509_v19 = vmul.f32 0.0078125, %v2498_v18  ;;  %v2313_v2 = vsel %vm2261_vm0, %v6216_v7, 0.0  ;;  %v2523_v14 = vmul.f32 %v6231_v32, %v6231_v32 }
 0x3e8   : > { %v6220_v4 = vpop.eup %5319  ;;  %v6251_v20 = vsub.f32 %v6171_v27, %v2510_v36 }
 0x3e9   : > { %2531 = vadd.xlane.f32.xlu1 %v2522_v35  ;;  %v6224_v25 = vpop.eup %5321  ;;  %v2331_v29 = vsel %vm2261_vm0, %v6220_v4, 0.0  ;;  %v6234_v59 = vsub.f32 %v6173_v3, %v2509_v19  ;;  %v2504_v39 = vpop.xlane.xlu1 %2503 }
 0x3ea   : > { %v2502_v28 = vpop.xlane.xlu0 %2501  ;;  %v6228_v17 = vpop.eup %5323  ;;  %v2319_v34 = vsel %vm2261_vm0, %v6224_v25, 0.0  ;;  %v2512_v42 = vmul.f32 0.0078125, %v2504_v39  ;;  %v2526_v48 = vmul.f32 %v6251_v20, %v6251_v20 }
 0x3eb   : > { %2323 = vadd.xlane.f32.xlu0 %v2322_v55  ;;  %v2511_v26 = vmul.f32 0.0078125, %v2502_v28  ;;  %v2328_v6 = vsel %vm2261_vm0, %v6228_v17, 0.0  ;;  %v2525_v41 = vmul.f32 %v6234_v59, %v6234_v59 }
 0x3ec   : > { %v6258_v62 = vsub.f32 %v6178_v31, %v2512_v42 }
 0x3ed   : > { %2314 = vadd.xlane.f32.xlu1 %v2313_v2  ;;  %v6246_v40 = vsub.f32 %v6180_v52, %v2511_v26 }
 0x3ee   : > { %v2528_v43 = vmul.f32 %v6258_v62, %v6258_v62 }
 0x3ef   : > { %2332 = vadd.xlane.f32.xlu0 %v2331_v29  ;;  %v2527_v46 = vmul.f32 %v6246_v40, %v6246_v40 }
 0x3f1   : > { %2320 = vadd.xlane.f32.xlu1 %v2319_v34 }
 0x3f3   : > { %2329 = vadd.xlane.f32.xlu0 %v2328_v6 }
 0x3f5   : > { %2533 = vadd.xlane.f32.xlu1 %v2523_v14 }
 0x3f7   : > { %2537 = vadd.xlane.f32.xlu0 %v2525_v41 }
 0x3f9   : > { %2535 = vadd.xlane.f32.xlu1 %v2524_v30 }
 0x3fb   : > { %2541 = vadd.xlane.f32.xlu0 %v2527_v46 }
 0x3fd   : > { %2539 = vadd.xlane.f32.xlu1 %v2526_v48 }
 0x401   : > { %2543 = vadd.xlane.f32.xlu1 %v2528_v43 }
 0x46a   : > { %v2312_v44 = vpop.xlane.xlu0 %2311 }
 0x46b   : > { %5325 = vrcp.f32 %v2312_v44 }
 0x470   : > { %v2318_v10 = vpop.xlane.xlu0 %2317 }
 0x471   : > { %5327 = vrcp.f32 %v2318_v10 }
 0x472   : > { %v2530_v47 = vpop.xlane.xlu1 %2529 }
 0x473   : > { %v2545_v61 = vmul.f32 0.0078125, %v2530_v47 }
 0x474   : > { %v2327_v8 = vpop.xlane.xlu0 %2326 }
 0x475   : > { %v5326_v51 = vpop.eup %5325  ;;  %v2553_v35 = vadd.f32 1e-05, %v2545_v61 }
 0x476   : > { %v2342_v63 = vmul.f32 %v5326_v51, %v6189_v0  ;;  %v2532_v54 = vpop.xlane.xlu1 %2531 }
 0x477   : > { %v2546_v33 = vmul.f32 0.0078125, %v2532_v54 }
 0x478   : > { %v2324_v18 = vpop.xlane.xlu0 %2323  ;;  %4823 = vmatprep.mubr.msk.f32.mxu1 %vm2261_vm0, %v2342_v63 }
 0x479   : > { %v2554_v19 = vadd.f32 1e-05, %v2546_v33  ;;  %v4242_v33 = vld [vmem:[%s6670_s8] ss:$0 sm:$0xff] }
 0x47a   : > { %v2315_v55 = vpop.xlane.xlu1 %2314 }
 0x47b   : > { %5329 = vrcp.f32 %v2315_v55  ;;  %v5328_v26 = vpop.eup %5327 }
 0x47c   : > { %v2333_v11 = vpop.xlane.xlu0 %2332  ;;  %5331 = vrsqrt.f32 %v2553_v35  ;;  %v2344_v43 = vmul.f32 %v5328_v26, %v6196_v49 }
 0x47d   : > { %5333 = vrcp.f32 %v2324_v18 }
 0x47e   : > { %v2321_v2 = vpop.xlane.xlu1 %2320 }
 0x47f   : > { %5335 = vrcp.f32 %v2321_v2 }
 0x480   : > { %v2330_v28 = vpop.xlane.xlu0 %2329  ;;  %5337 = vrcp.f32 %v2327_v8 }
 0x481   : > { %5339 = vrsqrt.f32 %v2554_v19 }
 0x482   : > { %v2534_v29 = vpop.xlane.xlu1 %2533  ;;  %5341 = vrcp.f32 %v2330_v28 }
 0x483   : > { %v2547_v0 = vmul.f32 0.0078125, %v2534_v29  ;;  %5343 = vrcp.f32 %v2333_v11 }
 0x484   : > { %v2538_v57 = vpop.xlane.xlu0 %2537 }
 0x485   : > { %v2549_v24 = vmul.f32 0.0078125, %v2538_v57  ;;  %v2555_v34 = vadd.f32 1e-05, %v2547_v0  ;;  %v5330_v6 = vpop.eup %5329  ;;  %v4243_v0 = vld [vmem:[%s6671_s9] ss:$0 sm:$0xff] }
 0x486   : > { %v2536_v14 = vpop.xlane.xlu1 %2535  ;;  %v5332_v39 = vpop.eup %5331  ;;  %v2343_v41 = vmul.f32 %v5330_v6, %v6216_v7 }
 0x487   : > { %v2557_v36 = vadd.f32 1e-05, %v2549_v24  ;;  %5345 = vrsqrt.f32 %v2555_v34  ;;  %v2548_v42 = vmul.f32 0.0078125, %v2536_v14  ;;  %v5334_v46 = vpop.eup %5333  ;;  %v2569_v54 = vmul.f32 %v5332_v39, %v6199_v5 }
 0x488   : > { %v2542_v30 = vpop.xlane.xlu0 %2541  ;;  %4824 = vmatmul.mubr.msk.f32.vlgmr.msra.gmra.mrb[28].mxu1 %vm2261_vm0, %v2343_v41  ;;  %v2346_v49 = vmul.f32 %v5334_v46, %v6212_v15 }
 0x489   : > { %5347 = vrsqrt.f32 %v2557_v36  ;;  %v2551_v48 = vmul.f32 0.0078125, %v2542_v30  ;;  %v5336_v44 = vpop.eup %5335  ;;  %v2556_v10 = vadd.f32 1e-05, %v2548_v42  ;;  %4836 = vmatpush3.xpose.msra.mxu1 %v6076_v38  ;;  %4826 = vmatprep.mubr.msk.f32.mxu1 %vm2261_vm0, %v2344_v43  ;;  %v2583_v2 = vmul.f32 %v4242_v33, %v2569_v54 }
 0x48a   : > { %v2540_v8 = vpop.xlane.xlu1 %2539  ;;  %v2345_v7 = vmul.f32 %v5336_v44, %v6224_v25  ;;  %v5338_v51 = vpop.eup %5337  ;;  %4849 = vmatprep.subr.mxu1 %v6076_v38 }
 0x48b   : > { %v2559_v47 = vadd.f32 1e-05, %v2551_v48  ;;  %5349 = vrsqrt.f32 %v2556_v10  ;;  %v2550_v61 = vmul.f32 0.0078125, %v2540_v8  ;;  %v5340_v63 = vpop.eup %5339  ;;  %v2347_v19 = vmul.f32 %v5338_v51, %v6208_v12 }
 0x48c   : > { %v5342_v18 = vpop.eup %5341  ;;  %4827 = vmatmul.mubr.msk.f32.gmra.mrb[30].mxu1 %vm2261_vm0, %v2345_v7  ;;  %v2570_v55 = vmul.f32 %v5340_v63, %v6204_v21  ;;  %v2597_v26 = vadd.f32 %v4243_v0, %v2583_v2 }
 0x48d   : > { %5351 = vrsqrt.f32 %v2559_v47  ;;  %v2558_v35 = vadd.f32 1e-05, %v2550_v61  ;;  %4829 = vmatprep.mubr.msk.f32.mxu1 %vm2261_vm0, %v2346_v49  ;;  %v5344_v15 = vpop.eup %5343  ;;  %v2348_v5 = vmul.f32 %v5342_v18, %v6228_v17 }
 0x48e   : > { %v2544_v25 = vpop.xlane.xlu1 %2543  ;;  %v2349_v12 = vmul.f32 %v5344_v15, %v6220_v4  ;;  %v2584_v24 = vmul.f32 %v4242_v33, %v2570_v55 }
 0x48f   : > { %5353 = vrsqrt.f32 %v2558_v35  ;;  %v2552_v11 = vmul.f32 0.0078125, %v2544_v25 }
 0x490   : > { %4830 = vmatmul.mubr.msk.f32.gmra.mrb[32].mxu1 %vm2261_vm0, %v2347_v19  ;;  %v2598_v41 = vadd.f32 %v4243_v0, %v2584_v24 }
 0x491   : > { %v5346_v28 = vpop.eup %5345  ;;  %v2560_v29 = vadd.f32 1e-05, %v2552_v11  ;;  %4832 = vmatprep.mubr.msk.f32.mxu1 %vm2261_vm0, %v2348_v5 }
 0x492   : > { %v2571_v21 = vmul.f32 %v5346_v28, %v6231_v32 }
 0x493   : > { %v5348_v57 = vpop.eup %5347  ;;  %5355 = vrsqrt.f32 %v2560_v29 }
 0x494   : > { %v2585_v17 = vmul.f32 %v4242_v33, %v2571_v21  ;;  %v2573_v34 = vmul.f32 %v5348_v57, %v6234_v59  ;;  %4833 = vmatmul.mubr.msk.f32.gmra.mrb[34].mxu1 %vm2261_vm0, %v2349_v12 }
 0x495   : > { %v5350_v6 = vpop.eup %5349  ;;  %4837 = vmatprep.mubr.f32.mxu1 %v2597_v26 }
 0x496   : > { %v2599_v14 = vadd.f32 %v4243_v0, %v2585_v17  ;;  %v2572_v39 = vmul.f32 %v5350_v6, %v6241_v37  ;;  %v2587_v30 = vmul.f32 %v4242_v33, %v2573_v34 }
 0x497   : > { %v5352_v36 = vpop.eup %5351 }
 0x498   : > { %v2586_v42 = vmul.f32 %v4242_v33, %v2572_v39  ;;  %v2575_v32 = vmul.f32 %v5352_v36, %v6246_v40  ;;  %4838 = vmatmul.mubr.f32.vlgmr.msra.gmra.mrb[36].mxu1 %v2598_v41  ;;  %v2601_v48 = vadd.f32 %v4243_v0, %v2587_v30 }
 0x499   : > { %v5354_v46 = vpop.eup %5353  ;;  %4850 = vmatpush3.msra.mxu1 %v6076_v38  ;;  %4840 = vmatprep.mubr.f32.mxu1 %v2599_v14 }
 0x49a   : > { %v2600_v4 = vadd.f32 %v4243_v0, %v2586_v42  ;;  %v2574_v59 = vmul.f32 %v5354_v46, %v6251_v20  ;;  %v2589_v44 = vmul.f32 %v4242_v33, %v2575_v32 }
 0x49c   : > { %v2588_v43 = vmul.f32 %v4242_v33, %v2574_v59  ;;  %4841 = vmatmul.mubr.f32.gmra.mrb[38].mxu1 %v2600_v4  ;;  %v2603_v8 = vadd.f32 %v4243_v0, %v2589_v44 }
 0x49d   : > { %v5356_v10 = vpop.eup %5355  ;;  %4843 = vmatprep.mubr.f32.mxu1 %v2601_v48 }
 0x49e   : > { %v2602_v37 = vadd.f32 %v4243_v0, %v2588_v43  ;;  %v2576_v47 = vmul.f32 %v5356_v10, %v6258_v62 }
 0x4a0   : > { %v2590_v7 = vmul.f32 %v4242_v33, %v2576_v47  ;;  %4844 = vmatmul.mubr.f32.gmra.mrb[40].mxu1 %v2602_v37 }
 0x4a1   : > { %4846 = vmatprep.mubr.f32.mxu1 %v2603_v8 }
 0x4a2   : > { %v2604_v40 = vadd.f32 %v4243_v0, %v2590_v7 }
 0x4a4   : > { %4847 = vmatmul.mubr.f32.gmra.mrb[42].mxu1 %v2604_v40 }
 0x55b   : > { %v6297_v38 = vpop.f32.mrb[28].mxu1 }
 0x55c   : > { %v6299_v51 = vpop.f32.mrb[29].mxu1 }
 0x55f   : > { %v6301_v20 = vpop.f32.mrb[30].mxu1 }
 0x560   : > { %v6303_v61 = vpop.f32.mrb[31].mxu1 }
 0x563   : > { %v6305_v63 = vpop.f32.mrb[32].mxu1 }
 0x564   : > { %v6307_v49 = vpop.f32.mrb[33].mxu1 }
 0x567   : > { %v6309_v54 = vpop.f32.mrb[34].mxu1 }
 0x568   : > { %v6311_v62 = vpop.f32.mrb[35].mxu1 }
 0x56b   : > { %v4839_v18 = vpop.f32.mrb[36].mxu1 }
 0x56c   : > { %v2711_v35 = vmul.f32 0.088388346, %v4839_v18  ;;  %v2671_v33 = vpop.f32.mrb[37].mxu1 }
 0x56d   : > { %v2710_v25 = vmul.f32 0.088388346, %v2671_v33 }
 0x56e   : > { %v2721_v55 = vsel %vm2261_vm0, %v2711_v35, -inf }
 0x56f   : > { %2722 = vmax.xlane.f32.xlu1 %v2721_v55  ;;  %v4842_v11 = vpop.f32.mrb[38].mxu1  ;;  %v2718_v19 = vsel %vm2261_vm0, %v2710_v25, -inf }
 0x570   : > { %v2713_v15 = vmul.f32 0.088388346, %v4842_v11  ;;  %2719 = vmax.xlane.f32.xlu0 %v2718_v19  ;;  %v2681_v5 = vpop.f32.mrb[39].mxu1 }
 0x571   : > { %v2712_v2 = vmul.f32 0.088388346, %v2681_v5 }
 0x572   : > { %v2727_v28 = vsel %vm2261_vm0, %v2713_v15, -inf }
 0x573   : > { %2728 = vmax.xlane.f32.xlu1 %v2727_v28  ;;  %v4845_v29 = vpop.f32.mrb[40].mxu1  ;;  %v2724_v0 = vsel %vm2261_vm0, %v2712_v2, -inf }
 0x574   : > { %v2715_v57 = vmul.f32 0.088388346, %v4845_v29  ;;  %2725 = vmax.xlane.f32.xlu0 %v2724_v0  ;;  %v2691_v21 = vpop.f32.mrb[41].mxu1 }
 0x575   : > { %v2714_v12 = vmul.f32 0.088388346, %v2691_v21 }
 0x576   : > { %v2733_v24 = vsel %vm2261_vm0, %v2715_v57, -inf }
 0x577   : > { %2734 = vmax.xlane.f32.xlu1 %v2733_v24  ;;  %v4848_v26 = vpop.f32.mrb[42].mxu1  ;;  %v2730_v17 = vsel %vm2261_vm0, %v2714_v12, -inf }
 0x578   : > { %v2717_v34 = vmul.f32 0.088388346, %v4848_v26  ;;  %2731 = vmax.xlane.f32.xlu0 %v2730_v17  ;;  %v2701_v6 = vpop.f32.mrb[43].mxu1 }
 0x579   : > { %v2716_v36 = vmul.f32 0.088388346, %v2701_v6 }
 0x57a   : > { %v2739_v14 = vsel %vm2261_vm0, %v2717_v34, -inf }
 0x57b   : > { %2740 = vmax.xlane.f32.xlu1 %v2739_v14  ;;  %v2736_v39 = vsel %vm2261_vm0, %v2716_v36, -inf }
 0x57c   : > { %2737 = vmax.xlane.f32.xlu0 %v2736_v39 }
 0x5fc   : > { %v2723_v41 = vpop.xlane.xlu1 %2722 }
 0x5fd   : > { %v2743_v42 = vsub.f32 %v2711_v35, %v2723_v41  ;;  %v2720_v30 = vpop.xlane.xlu0 %2719  ;;  %v6346_v41 = vadd.f32 %v6297_v38, %v5979_v56  ;;  %v6370_v56 = vadd.f32 %v6307_v49, %v5988_v13 }
 0x5fe   : > { %v2742_v32 = vsub.f32 %v2710_v25, %v2720_v30  ;;  %v6356_v30 = vadd.f32 %v6301_v20, %v5982_v60  ;;  %v6376_v60 = vadd.f32 %v6309_v54, %v5999_v23 }
 0x5ff   : > { %v2752_v46 = vmul.f32 1.442695, %v2743_v42  ;;  %v6350_v42 = vadd.f32 %v6299_v51, %v5976_v53  ;;  %v6366_v53 = vadd.f32 %v6305_v63, %v5990_v16 }
 0x600   : > { %v2750_v4 = vmul.f32 1.442695, %v2742_v32  ;;  %v2729_v59 = vpop.xlane.xlu1 %2728  ;;  %v6360_v32 = vadd.f32 %v6303_v61, %v5985_v1  ;;  %v6380_v1 = vadd.f32 %v6311_v62, %v5997_v22 }
 0x601   : > { %5357 = vpow2.f32 %v2752_v46  ;;  %v2745_v48 = vsub.f32 %v2713_v15, %v2729_v59  ;;  %v2726_v43 = vpop.xlane.xlu0 %2725 }
 0x602   : > { %5359 = vpow2.f32 %v2750_v4  ;;  %v2744_v44 = vsub.f32 %v2712_v2, %v2726_v43 }
 0x603   : > { %v2756_v10 = vmul.f32 1.442695, %v2745_v48 }
 0x604   : > { %v2754_v37 = vmul.f32 1.442695, %v2744_v44  ;;  %v2735_v47 = vpop.xlane.xlu1 %2734 }
 0x605   : > { %5361 = vpow2.f32 %v2756_v10  ;;  %v2747_v8 = vsub.f32 %v2715_v57, %v2735_v47  ;;  %v2732_v7 = vpop.xlane.xlu0 %2731 }
 0x606   : > { %5363 = vpow2.f32 %v2754_v37  ;;  %v2746_v40 = vsub.f32 %v2714_v12, %v2732_v7 }
 0x607   : > { %v2760_v18 = vmul.f32 1.442695, %v2747_v8 }
 0x608   : > { %v2758_v35 = vmul.f32 1.442695, %v2746_v40  ;;  %v2741_v33 = vpop.xlane.xlu1 %2740 }
 0x609   : > { %5365 = vpow2.f32 %v2760_v18  ;;  %v2749_v25 = vsub.f32 %v2717_v34, %v2741_v33  ;;  %v2738_v55 = vpop.xlane.xlu0 %2737 }
 0x60a   : > { %5367 = vpow2.f32 %v2758_v35  ;;  %v2748_v11 = vsub.f32 %v2716_v36, %v2738_v55 }
 0x60b   : > { %v6321_v19 = vpop.eup %5357  ;;  %v2764_v15 = vmul.f32 1.442695, %v2749_v25 }
 0x60c   : > { %v6323_v5 = vpop.eup %5359  ;;  %v2762_v2 = vmul.f32 1.442695, %v2748_v11  ;;  %v2769_v28 = vsel %vm2261_vm0, %v6321_v19, 0.0 }
 0x60d   : > { %5369 = vpow2.f32 %v2764_v15  ;;  %2770 = vadd.xlane.f32.xlu1 %v2769_v28  ;;  %v2766_v29 = vsel %vm2261_vm0, %v6323_v5, 0.0 }
 0x60e   : > { %5371 = vpow2.f32 %v2762_v2  ;;  %2767 = vadd.xlane.f32.xlu0 %v2766_v29 }
 0x60f   : > { %v6329_v0 = vpop.eup %5361 }
 0x610   : > { %v5364_v57 = vpop.eup %5363  ;;  %v2775_v21 = vsel %vm2261_vm0, %v6329_v0, 0.0 }
 0x611   : > { %2776 = vadd.xlane.f32.xlu1 %v2775_v21  ;;  %v2772_v12 = vsel %vm2261_vm0, %v5364_v57, 0.0 }
 0x612   : > { %2773 = vadd.xlane.f32.xlu0 %v2772_v12 }
 0x613   : > { %v6334_v24 = vpop.eup %5365 }
 0x614   : > { %v5368_v26 = vpop.eup %5367  ;;  %v2781_v17 = vsel %vm2261_vm0, %v6334_v24, 0.0 }
 0x615   : > { %2782 = vadd.xlane.f32.xlu1 %v2781_v17  ;;  %v2778_v34 = vsel %vm2261_vm0, %v5368_v26, 0.0 }
 0x616   : > { %2779 = vadd.xlane.f32.xlu0 %v2778_v34 }
 0x617   : > { %v6339_v6 = vpop.eup %5369 }
 0x618   : > { %v5372_v36 = vpop.eup %5371  ;;  %v2787_v14 = vsel %vm2261_vm0, %v6339_v6, 0.0 }
 0x619   : > { %2788 = vadd.xlane.f32.xlu1 %v2787_v14  ;;  %v2784_v39 = vsel %vm2261_vm0, %v5372_v36, 0.0 }
 0x61a   : > { %2785 = vadd.xlane.f32.xlu0 %v2784_v39 }
 0x61d   : > { %2993 = vmax.xlane.f32.xlu1 %v6346_v41 }
 0x61e   : > { %2991 = vmax.xlane.f32.xlu0 %v6350_v42 }
 0x621   : > { %2997 = vmax.xlane.f32.xlu1 %v6356_v30 }
 0x622   : > { %2995 = vmax.xlane.f32.xlu0 %v6360_v32 }
 0x625   : > { %3001 = vmax.xlane.f32.xlu1 %v6366_v53 }
 0x626   : > { %2999 = vmax.xlane.f32.xlu0 %v6370_v56 }
 0x629   : > { %3005 = vmax.xlane.f32.xlu1 %v6376_v60 }
 0x62a   : > { %3003 = vmax.xlane.f32.xlu0 %v6380_v1 }
 0x62d   : > { %2945 = vadd.xlane.f32.xlu1 %v6346_v41 }
 0x62e   : > { %2943 = vadd.xlane.f32.xlu0 %v6350_v42 }
 0x631   : > { %2949 = vadd.xlane.f32.xlu1 %v6356_v30 }
 0x632   : > { %2947 = vadd.xlane.f32.xlu0 %v6360_v32 }
 0x69a   : > { %v2771_v13 = vpop.xlane.xlu1 %2770 }
 0x69b   : > { %5373 = vrcp.f32 %v2771_v13  ;;  %v2768_v16 = vpop.xlane.xlu0 %2767 }
 0x69c   : > { %5375 = vrcp.f32 %v2768_v16 }
 0x69e   : > { %v2777_v23 = vpop.xlane.xlu1 %2776 }
 0x69f   : > { %5377 = vrcp.f32 %v2777_v23  ;;  %v2774_v22 = vpop.xlane.xlu0 %2773 }
 0x6a0   : > { %5379 = vrcp.f32 %v2774_v22 }
 0x6a2   : > { %v2783_v38 = vpop.xlane.xlu1 %2782 }
 0x6a3   : > { %5381 = vrcp.f32 %v2783_v38  ;;  %v2780_v51 = vpop.xlane.xlu0 %2779 }
 0x6a4   : > { %5383 = vrcp.f32 %v2780_v51 }
 0x6a5   : > { %v5374_v20 = vpop.eup %5373 }
 0x6a6   : > { %v5376_v61 = vpop.eup %5375  ;;  %v2789_v63 = vpop.xlane.xlu1 %2788  ;;  %v2799_v62 = vmul.f32 %v5374_v20, %v6321_v19 }
 0x6a7   : > { %5385 = vrcp.f32 %v2789_v63  ;;  %v2786_v49 = vpop.xlane.xlu0 %2785  ;;  %v2798_v54 = vmul.f32 %v5376_v61, %v6323_v5 }
 0x6a8   : > { %5387 = vrcp.f32 %v2786_v49 }
 0x6a9   : > { %v5378_v46 = vpop.eup %5377  ;;  %4851 = vmatprep.mubr.msk.f32.mxu1 %vm2261_vm0, %v2798_v54 }
 0x6aa   : > { %v5380_v4 = vpop.eup %5379  ;;  %4852 = vmatmul.mubr.msk.f32.vlgmr.msra.gmra.mrb[44].mxu1 %vm2261_vm0, %v2799_v62  ;;  %v2801_v48 = vmul.f32 %v5378_v46, %v6329_v0 }
 0x6ab   : > { %v2800_v59 = vmul.f32 %v5380_v4, %v5364_v57 }
 0x6ad   : > { %v5382_v43 = vpop.eup %5381  ;;  %4854 = vmatprep.mubr.msk.f32.mxu1 %vm2261_vm0, %v2800_v59 }
 0x6ae   : > { %v5384_v44 = vpop.eup %5383  ;;  %4855 = vmatmul.mubr.msk.f32.gmra.mrb[46].mxu1 %vm2261_vm0, %v2801_v48  ;;  %v2803_v37 = vmul.f32 %v5382_v43, %v6334_v24 }
 0x6af   : > { %v2802_v10 = vmul.f32 %v5384_v44, %v5368_v26 }
 0x6b1   : > { %v5386_v47 = vpop.eup %5385  ;;  %4857 = vmatprep.mubr.msk.f32.mxu1 %vm2261_vm0, %v2802_v10 }
 0x6b2   : > { %v5388_v8 = vpop.eup %5387  ;;  %4858 = vmatmul.mubr.msk.f32.gmra.mrb[48].mxu1 %vm2261_vm0, %v2803_v37  ;;  %v2805_v40 = vmul.f32 %v5386_v47, %v6339_v6 }
 0x6b3   : > { %v2804_v7 = vmul.f32 %v5388_v8, %v5372_v36 }
 0x6b5   : > { %4860 = vmatprep.mubr.msk.f32.mxu1 %vm2261_vm0, %v2804_v7 }
 0x6b6   : > { %4861 = vmatmul.mubr.msk.f32.gmra.mrb[50].mxu1 %vm2261_vm0, %v2805_v40 }
 0x77d   : > { %v4853_v18 = vpop.f32.mrb[44].mxu1 }
 0x77e   : > { %v6402_v35 = vadd.f32 %v4853_v18, %v6155_v45  ;;  %v2896_v33 = vpop.f32.mrb[45].mxu1 }
 0x77f   : > { %v6405_v25 = vadd.f32 %v2896_v33, %v6157_v50 }
 0x780   : > { %3009 = vmax.xlane.f32.xlu1 %v6402_v35 }
 0x781   : > { %3007 = vmax.xlane.f32.xlu0 %v6405_v25  ;;  %v4856_v55 = vpop.f32.mrb[46].mxu1 }
 0x782   : > { %v2906_v11 = vpop.f32.mrb[47].mxu1  ;;  %v6412_v15 = vadd.f32 %v4856_v55, %v6163_v9 }
 0x783   : > { %v6415_v5 = vadd.f32 %v2906_v11, %v6165_v58 }
 0x784   : > { %2961 = vadd.xlane.f32.xlu1 %v6402_v35 }
 0x785   : > { %2959 = vadd.xlane.f32.xlu0 %v6405_v25  ;;  %v4859_v19 = vpop.f32.mrb[48].mxu1 }
 0x786   : > { %v2916_v45 = vpop.f32.mrb[49].mxu1  ;;  %v6422_v28 = vadd.f32 %v4859_v19, %v6171_v27  ;;  %v4252_v27 = vld [vmem:[%s6674_s12 + $0x40] sm:$0xff] }
 0x787   : > { %v6425_v9 = vadd.f32 %v2916_v45, %v6173_v3  ;;  %4879 = vmatprep.mubr.msk.f32.mxu1 %vm3048_vm1, %v4252_v27  ;;  %v2994_v3 = vpop.xlane.xlu1 %2993  ;;  %v4253_v27 = vld [vmem:[%s6674_s12 + $0x48] sm:$0xff] }
 0x788   : > { %3013 = vmax.xlane.f32.xlu1 %v6412_v15 }
 0x789   : > { %3011 = vmax.xlane.f32.xlu0 %v6415_v5  ;;  %v4862_v50 = vpop.f32.mrb[50].mxu1 }
 0x78a   : > { %v2926_v2 = vpop.f32.mrb[51].mxu1  ;;  %v6430_v58 = vadd.f32 %v4862_v50, %v6178_v31  ;;  %v2992_v31 = vpop.xlane.xlu0 %2991 }
 0x78b   : > { %v6433_v29 = vadd.f32 %v2926_v2, %v6180_v52  ;;  %v2998_v52 = vpop.xlane.xlu1 %2997 }
 0x78c   : > { %2965 = vadd.xlane.f32.xlu1 %v6412_v15 }
 0x78d   : > { %2963 = vadd.xlane.f32.xlu0 %v6415_v5 }
 0x78e   : > { %v2996_v0 = vpop.xlane.xlu0 %2995 }
 0x78f   : > { %v3002_v57 = vpop.xlane.xlu1 %3001 }
 0x790   : > { %3017 = vmax.xlane.f32.xlu1 %v6422_v28 }
 0x791   : > { %3015 = vmax.xlane.f32.xlu0 %v6425_v9 }
 0x792   : > { %v3000_v21 = vpop.xlane.xlu0 %2999 }
 0x793   : > { %v3006_v12 = vpop.xlane.xlu1 %3005 }
 0x794   : > { %3021 = vmax.xlane.f32.xlu1 %v6430_v58 }
 0x795   : > { %3019 = vmax.xlane.f32.xlu0 %v6433_v29 }
 0x796   : > { %v3004_v24 = vpop.xlane.xlu0 %3003 }
 0x797   : > { %v2946_v26 = vpop.xlane.xlu1 %2945 }
 0x798   : > { %2953 = vadd.xlane.f32.xlu1 %v6366_v53 }
 0x799   : > { %2951 = vadd.xlane.f32.xlu0 %v6370_v56 }
 0x79a   : > { %v2944_v17 = vpop.xlane.xlu0 %2943 }
 0x79b   : > { %v2950_v34 = vpop.xlane.xlu1 %2949 }
 0x79c   : > { %2969 = vadd.xlane.f32.xlu1 %v6422_v28 }
 0x79d   : > { %2967 = vadd.xlane.f32.xlu0 %v6425_v9 }
 0x79e   : > { %v2948_v6 = vpop.xlane.xlu0 %2947 }
 0x7a0   : > { %2957 = vadd.xlane.f32.xlu1 %v6376_v60 }
 0x7a1   : > { %2955 = vadd.xlane.f32.xlu0 %v6380_v1 }
 0x7a4   : > { %2973 = vadd.xlane.f32.xlu1 %v6430_v58 }
 0x7a5   : > { %2971 = vadd.xlane.f32.xlu0 %v6433_v29 }
 0x80d   : > { %v3010_v36 = vpop.xlane.xlu1 %3009 }
 0x80e   : > { %v3024_v14 = vmax.f32 %v2994_v3, %v3010_v36  ;;  %v3008_v39 = vpop.xlane.xlu0 %3007 }
 0x80f   : > { %v3023_v13 = vmax.f32 %v2992_v31, %v3008_v39  ;;  %v4254_v31 = vld [vmem:[%s6674_s12 + $0x50] sm:$0xff] }
 0x811   : > { %v6449_v16 = vpack.c.bf16 %v3024_v14, %v3023_v13  ;;  %v2962_v23 = vpop.xlane.xlu1 %2961  ;;  %v4257_v14 = vld [vmem:[%s6674_s12 + $0x68] sm:$0xff]  ;;  %v4258_v13 = vld [vmem:[%s6674_s12 + $0x70] sm:$0xff] }
 0x812   : > { %v2960_v22 = vpop.xlane.xlu0 %2959  ;;  %v2976_v46 = vadd.f32 %v2962_v23, %v2946_v26 }
 0x813   : > { %5000 = vmatprep.subr.bf16.mxu1 %v6449_v16  ;;  %v2975_v48 = vadd.f32 %v2960_v22, %v2944_v17 }
 0x814   : > { %5002 = vmatpush3.bf16.msra.mxu1 %v6449_v16  ;;  %v2984_v37 = vmul.f32 0.00390625, %v2976_v46  ;;  %v3033_v46 = vld [vmem:[%s6674_s12 + $0x10] sm:$0xff] }
 0x815   : > { %v3014_v38 = vpop.xlane.xlu1 %3013  ;;  %v2983_v7 = vmul.f32 0.00390625, %v2975_v48  ;;  %v3037_v48 = vld [vmem:[%s6674_s12 + $0x30] sm:$0xff] }
 0x816   : > { %v3026_v51 = vmax.f32 %v2998_v52, %v3014_v38  ;;  %v3012_v20 = vpop.xlane.xlu0 %3011 }
 0x817   : > { %v3025_v61 = vmax.f32 %v2996_v0, %v3012_v20  ;;  %v6463_v45 = vpack.c.bf16 %v2984_v37, %v2983_v7  ;;  %v4259_v20 = vld [vmem:[%s6674_s12 + $0x78] sm:$0xff]  ;;  %v4298_v7 = vld [vmem:[%s6674_s12 + $0xf0] sm:$0xff] }
 0x818   : > { %v4295_v37 = vld [vmem:[%s6674_s12 + $0xd8] sm:$0xff] }
 0x819   : > { %v6453_v63 = vpack.c.bf16 %v3026_v51, %v3025_v61  ;;  %v2966_v49 = vpop.xlane.xlu1 %2965 }
 0x81a   : > { %v2964_v54 = vpop.xlane.xlu0 %2963  ;;  %v2978_v40 = vadd.f32 %v2966_v49, %v2950_v34  ;;  %v4256_v34 = vld [vmem:[%s6674_s12 + $0x60] sm:$0xff] }
 0x81b   : > { %5004 = vmatprep.subr.bf16.mxu1 %v6453_v63  ;;  %v2977_v18 = vadd.f32 %v2964_v54, %v2948_v6  ;;  %v3031_v49 = vld [vmem:[%s6674_s12] sm:$0xff] }
 0x81c   : > { %5006 = vmatpush3.bf16.msra.mxu1 %v6453_v63  ;;  %v2986_v50 = vmul.f32 0.00390625, %v2978_v40  ;;  %v4299_v40 = vld [vmem:[%s6674_s12 + $0xf8] sm:$0xff] }
 0x81d   : > { %v3018_v62 = vpop.xlane.xlu1 %3017  ;;  %v2985_v2 = vmul.f32 0.00390625, %v2977_v18  ;;  %v4284_v18 = vld [vmem:[%s6674_s12 + $0x80] sm:$0xff] }
 0x81e   : > { %v3028_v4 = vmax.f32 %v3002_v57, %v3018_v62  ;;  %v3016_v59 = vpop.xlane.xlu0 %3015  ;;  %v3032_v62 = vld [vmem:[%s6674_s12 + $0x8] sm:$0xff] }
 0x81f   : > { %v3027_v43 = vmax.f32 %v3000_v21, %v3016_v59  ;;  %v6474_v57 = vpack.c.bf16 %v2986_v50, %v2985_v2  ;;  %v3035_v59 = vld [vmem:[%s6674_s12 + $0x20] sm:$0xff]  ;;  %v4290_v50 = vld [vmem:[%s6674_s12 + $0xb0] sm:$0xff]  ;;  %v4291_v2 = vld [vmem:[%s6674_s12 + $0xb8] sm:$0xff] }
 0x821   : > { %v6457_v44 = vpack.c.bf16 %v3028_v4, %v3027_v43  ;;  %v3022_v10 = vpop.xlane.xlu1 %3021  ;;  %v3034_v4 = vld [vmem:[%s6674_s12 + $0x18] sm:$0xff]  ;;  %v4292_v43 = vld [vmem:[%s6674_s12 + $0xc0] sm:$0xff] }
 0x822   : > { %v3030_v47 = vmax.f32 %v3006_v12, %v3022_v10  ;;  %v3020_v8 = vpop.xlane.xlu0 %3019  ;;  %v4294_v10 = vld [vmem:[%s6674_s12 + $0xd0] sm:$0xff] }
 0x823   : > { %v3029_v33 = vmax.f32 %v3004_v24, %v3020_v8  ;;  %5008 = vmatprep.subr.bf16.mxu1 %v6457_v44  ;;  %v4255_v24 = vld [vmem:[%s6674_s12 + $0x58] sm:$0xff]  ;;  %v4297_v8 = vld [vmem:[%s6674_s12 + $0xe8] sm:$0xff] }
 0x824   : > { %5010 = vmatpush3.bf16.msra.mxu1 %v6457_v44 }
 0x825   : > { %v6461_v55 = vpack.c.bf16 %v3030_v47, %v3029_v33  ;;  %v2954_v11 = vpop.xlane.xlu1 %2953  ;;  %v4296_v47 = vld [vmem:[%s6674_s12 + $0xe0] sm:$0xff]  ;;  %v4285_v33 = vld [vmem:[%s6674_s12 + $0x88] sm:$0xff] }
 0x826   : > { %v2952_v19 = vpop.xlane.xlu0 %2951 }
 0x827   : > { %5012 = vmatprep.subr.bf16.mxu1 %v6461_v55 }
 0x828   : > { %5014 = vmatpush3.bf16.msra.mxu1 %v6461_v55 }
 0x829   : > { %5016 = vmatprep.subr.bf16.mxu1 %v6463_v45  ;;  %v2970_v3 = vpop.xlane.xlu1 %2969 }
 0x82a   : > { %v2980_v52 = vadd.f32 %v2970_v3, %v2954_v11  ;;  %v2968_v0 = vpop.xlane.xlu0 %2967  ;;  %v4287_v11 = vld [vmem:[%s6674_s12 + $0x98] sm:$0xff] }
 0x82b   : > { %v2979_v21 = vadd.f32 %v2968_v0, %v2952_v19  ;;  %4880 = vmatmul.mubr.msk.f32.vlgmr.msra.gmra.mrb[52].mxu1 %vm3048_vm1, %v4253_v27  ;;  %v4288_v19 = vld [vmem:[%s6674_s12 + $0xa0] sm:$0xff]  ;;  %v5461_v27 = vmov 0  }
 0x82c   : > { %v2988_v12 = vmul.f32 0.00390625, %v2980_v52  ;;  %5018 = vmatpush3.bf16.msra.mxu1 %v6463_v45  ;;  %4882 = vmatprep.mubr.msk.f32.mxu1 %vm3048_vm1, %v4254_v31 }
 0x82d   : > { %v2987_v26 = vmul.f32 0.00390625, %v2979_v21  ;;  %5020 = vmatprep.subr.bf16.mxu1 %v6474_v57  ;;  %v2958_v17 = vpop.xlane.xlu1 %2957  ;;  %5169 = vset.pattern.permute.xlu1 %v5461_v27 }
 0x82e   : > { %v2956_v6 = vpop.xlane.xlu0 %2955  ;;  %5170 = vset.pattern.permute.xlu0 %v5461_v27 }
 0x82f   : > { %v6486_v36 = vpack.c.bf16 %v2988_v12, %v2987_v26  ;;  %4883 = vmatmul.mubr.msk.f32.gmra.mrb[54].mxu1 %vm3048_vm1, %v4255_v24 }
 0x830   : > { %5022 = vmatpush3.bf16.msra.mxu1 %v6474_v57  ;;  %4885 = vmatprep.mubr.msk.f32.mxu1 %vm3048_vm1, %v4256_v34 }
 0x831   : > { %5024 = vmatprep.subr.bf16.mxu1 %v6486_v36  ;;  %v2974_v39 = vpop.xlane.xlu1 %2973 }
 0x832   : > { %v2982_v23 = vadd.f32 %v2974_v39, %v2958_v17  ;;  %v2972_v22 = vpop.xlane.xlu0 %2971 }
 0x833   : > { %v2981_v38 = vadd.f32 %v2972_v22, %v2956_v6  ;;  %4886 = vmatmul.mubr.msk.f32.gmra.mrb[56].mxu1 %vm3048_vm1, %v4257_v14 }
 0x834   : > { %v2990_v51 = vmul.f32 0.00390625, %v2982_v23  ;;  %5026 = vmatpush3.bf16.msra.mxu1 %v6486_v36  ;;  %4888 = vmatprep.mubr.msk.f32.mxu1 %vm3048_vm1, %v4258_v13 }
 0x835   : > { %v2989_v61 = vmul.f32 0.00390625, %v2981_v38 }
 0x837   : > { %v5027_v54 = vpack.c.bf16 %v2990_v51, %v2989_v61  ;;  %4889 = vmatmul.mubr.msk.f32.gmra.mrb[58].mxu1 %vm3048_vm1, %v4259_v20 }
 0x838   : > { %4907 = vmatprep.mubr.msk.f32.mxu1 %vm3048_vm1, %v3031_v49 }
 0x839   : > { %5028 = vmatprep.subr.bf16.mxu1 %v5027_v54 }
 0x83a   : > { %5030 = vmatpush3.bf16.msra.mxu1 %v5027_v54 }
 0x83b   : > { %5032 = vmatprep.subr.bf16.mxu1 %v6449_v16 }
 0x83d   : > { %4908 = vmatmul.mubr.msk.f32.vlgmr.msra.gmra.mrb[52].mxu1 %vm3048_vm1, %v3032_v62 }
 0x83e   : > { %5034 = vmatpush3.bf16.msra.mxu1 %v6449_v16  ;;  %4910 = vmatprep.mubr.msk.f32.mxu1 %vm3048_vm1, %v3033_v46  ;;  %v3036_v16 = vld [vmem:[%s6674_s12 + $0x28] sm:$0xff] }
 0x83f   : > { %5036 = vmatprep.subr.bf16.mxu1 %v6453_v63 }
 0x841   : > { %4911 = vmatmul.mubr.msk.f32.gmra.mrb[54].mxu1 %vm3048_vm1, %v3034_v4 }
 0x842   : > { %5038 = vmatpush3.bf16.msra.mxu1 %v6453_v63  ;;  %4913 = vmatprep.mubr.msk.f32.mxu1 %vm3048_vm1, %v3035_v59  ;;  %v3038_v63 = vld [vmem:[%s6674_s12 + $0x38] sm:$0xff] }
 0x843   : > { %5040 = vmatprep.subr.bf16.mxu1 %v6457_v44 }
 0x845   : > { %4914 = vmatmul.mubr.msk.f32.gmra.mrb[56].mxu1 %vm3048_vm1, %v3036_v16 }
 0x846   : > { %5042 = vmatpush3.bf16.msra.mxu1 %v6457_v44  ;;  %4916 = vmatprep.mubr.msk.f32.mxu1 %vm3048_vm1, %v3037_v48  ;;  %v4293_v44 = vld [vmem:[%s6674_s12 + $0xc8] sm:$0xff] }
 0x847   : > { %5044 = vmatprep.subr.bf16.mxu1 %v6461_v55 }
 0x849   : > { %4917 = vmatmul.mubr.msk.f32.gmra.mrb[58].mxu1 %vm3048_vm1, %v3038_v63 }
 0x84a   : > { %5046 = vmatpush3.bf16.msra.mxu1 %v6461_v55  ;;  %4935 = vmatprep.mubr.msk.f32.mxu1 %vm3048_vm1, %v4292_v43  ;;  %v4286_v55 = vld [vmem:[%s6674_s12 + $0x90] sm:$0xff] }
 0x84b   : > { %5048 = vmatprep.subr.bf16.mxu1 %v6463_v45 }
 0x84d   : > { %4936 = vmatmul.mubr.msk.f32.vlgmr.msra.gmra.mrb[60].mxu1 %vm3048_vm1, %v4293_v44 }
 0x84e   : > { %5050 = vmatpush3.bf16.msra.mxu1 %v6463_v45  ;;  %4938 = vmatprep.mubr.msk.f32.mxu1 %vm3048_vm1, %v4294_v10  ;;  %v4289_v45 = vld [vmem:[%s6674_s12 + $0xa8] sm:$0xff] }
 0x84f   : > { %5052 = vmatprep.subr.bf16.mxu1 %v6474_v57 }
 0x851   : > { %4939 = vmatmul.mubr.msk.f32.gmra.mrb[62].mxu1 %vm3048_vm1, %v4295_v37 }
 0x852   : > { %5054 = vmatpush3.bf16.msra.mxu1 %v6474_v57  ;;  %4941 = vmatprep.mubr.msk.f32.mxu1 %vm3048_vm1, %v4296_v47 }
 0x853   : > { %5056 = vmatprep.subr.bf16.mxu1 %v6486_v36 }
 0x855   : > { %4942 = vmatmul.mubr.msk.f32.gmra.mrb[64].mxu1 %vm3048_vm1, %v4297_v8 }
 0x856   : > { %5058 = vmatpush3.bf16.msra.mxu1 %v6486_v36  ;;  %4944 = vmatprep.mubr.msk.f32.mxu1 %vm3048_vm1, %v4298_v7 }
 0x857   : > { %5060 = vmatprep.subr.bf16.mxu1 %v5027_v54 }
 0x859   : > { %4945 = vmatmul.mubr.msk.f32.gmra.mrb[66].mxu1 %vm3048_vm1, %v4299_v40 }
 0x85a   : > { %5062 = vmatpush3.bf16.msra.mxu1 %v5027_v54  ;;  %4963 = vmatprep.mubr.msk.f32.mxu1 %vm3048_vm1, %v4284_v18 }
 0x85d   : > { %4964 = vmatmul.mubr.msk.f32.vlgmr.msra.gmra.mrb[60].mxu1 %vm3048_vm1, %v4285_v33 }
 0x85e   : > { %4966 = vmatprep.mubr.msk.f32.mxu1 %vm3048_vm1, %v4286_v55 }
 0x861   : > { %4967 = vmatmul.mubr.msk.f32.gmra.mrb[62].mxu1 %vm3048_vm1, %v4287_v11 }
 0x862   : > { %4969 = vmatprep.mubr.msk.f32.mxu1 %vm3048_vm1, %v4288_v19 }
 0x865   : > { %4970 = vmatmul.mubr.msk.f32.gmra.mrb[64].mxu1 %vm3048_vm1, %v4289_v45 }
 0x866   : > { %4972 = vmatprep.mubr.msk.f32.mxu1 %vm3048_vm1, %v4290_v50 }
 0x869   : > { %4973 = vmatmul.mubr.msk.f32.gmra.mrb[66].mxu1 %vm3048_vm1, %v4291_v2 }
 0x910   : > { %v4909_v3 = vpop.f32.mrb[52].mxu1 }
 0x911   : > { %v4277_v31 = vmul.f32 -1.442695, %v4909_v3  ;;  %v3268_v52 = vpop.f32.mrb[53].mxu1 }
 0x912   : > { %v4276_v0 = vmul.f32 -1.442695, %v3268_v52 }
 0x913   : > { %5389 = vpow2.f32 %v4277_v31 }
 0x914   : > { %5391 = vpow2.f32 %v4276_v0  ;;  %v4912_v57 = vpop.f32.mrb[54].mxu1 }
 0x915   : > { %v4279_v21 = vmul.f32 -1.442695, %v4912_v57  ;;  %v3278_v12 = vpop.f32.mrb[55].mxu1  ;;  %v5251_v57 = vld [vmem:[%s6675_s13] sm:$0xff]  }
 0x916   : > { %v4278_v24 = vmul.f32 -1.442695, %v3278_v12  ;;  %4975 = vmatprep.subr.bf16.mxu1 %v5251_v57 }
 0x917   : > { %5393 = vpow2.f32 %v4279_v21  ;;  %v5252_v21 = vld [vmem:[%s6675_s13 + $0x8] sm:$0xff]   ;;  %4976 = vmatpush3.bf16.msra.mxu1 %v5251_v57 }
 0x918   : > { %5395 = vpow2.f32 %v4278_v24  ;;  %v4915_v26 = vpop.f32.mrb[56].mxu1  ;;  %4977 = vmatprep.subr.bf16.mxu1 %v5252_v21 }
 0x919   : > { %v4281_v17 = vmul.f32 -1.442695, %v4915_v26  ;;  %v3288_v34 = vpop.f32.mrb[57].mxu1 }
 0x91a   : > { %v4280_v6 = vmul.f32 -1.442695, %v3288_v34 }
 0x91b   : > { %5397 = vpow2.f32 %v4281_v17  ;;  %4978 = vmatpush3.bf16.msra.mxu1 %v5252_v21 }
 0x91c   : > { %5399 = vpow2.f32 %v4280_v6  ;;  %v4918_v36 = vpop.f32.mrb[58].mxu1 }
 0x91d   : > { %v5390_v14 = vpop.eup %5389  ;;  %v4283_v39 = vmul.f32 -1.442695, %v4918_v36  ;;  %v3298_v13 = vpop.f32.mrb[59].mxu1 }
 0x91e   : > { %v5392_v23 = vpop.eup %5391  ;;  %v3332_v22 = vadd.f32 1.0, %v5390_v14  ;;  %v4282_v38 = vmul.f32 -1.442695, %v3298_v13  ;;  %v5253_v14 = vld [vmem:[%s6675_s13 + $0x10] sm:$0xff]  }
 0x91f   : > { %v3331_v51 = vadd.f32 1.0, %v5392_v23  ;;  %5401 = vpow2.f32 %v4283_v39  ;;  %4979 = vmatprep.subr.bf16.mxu1 %v5253_v14 }
 0x920   : > { %5403 = vrcp.f32 %v3332_v22  ;;  %v5254_v22 = vld [vmem:[%s6675_s13 + $0x18] sm:$0xff]   ;;  %4980 = vmatpush3.bf16.msra.mxu1 %v5253_v14 }
 0x921   : > { %v5394_v20 = vpop.eup %5393  ;;  %5405 = vrcp.f32 %v3331_v51  ;;  %4981 = vmatprep.subr.bf16.mxu1 %v5254_v22 }
 0x922   : > { %v5396_v61 = vpop.eup %5395  ;;  %v3334_v49 = vadd.f32 1.0, %v5394_v20  ;;  %5407 = vpow2.f32 %v4282_v38 }
 0x923   : > { %v3333_v54 = vadd.f32 1.0, %v5396_v61 }
 0x924   : > { %5409 = vrcp.f32 %v3334_v49  ;;  %4982 = vmatpush3.bf16.msra.mxu1 %v5254_v22 }
 0x925   : > { %v5398_v62 = vpop.eup %5397  ;;  %5411 = vrcp.f32 %v3333_v54 }
 0x926   : > { %v5400_v46 = vpop.eup %5399  ;;  %v3336_v4 = vadd.f32 1.0, %v5398_v62 }
 0x927   : > { %v3335_v59 = vadd.f32 1.0, %v5400_v46 }
 0x928   : > { %5413 = vrcp.f32 %v3336_v4 }
 0x929   : > { %v5402_v16 = vpop.eup %5401  ;;  %5415 = vrcp.f32 %v3335_v59 }
 0x92a   : > { %v5404_v48 = vpop.eup %5403  ;;  %v3338_v63 = vadd.f32 1.0, %v5402_v16  ;;  %v5255_v16 = vld [vmem:[%s6675_s13 + $0x20] sm:$0xff]  }
 0x92b   : > { %v5406_v43 = vpop.eup %5405  ;;  %3686 = vperm.xlu1 %5169, %v5404_v48   ;;  %4983 = vmatprep.subr.bf16.mxu1 %v5255_v16 }
 0x92c   : > { %v5408_v44 = vpop.eup %5407  ;;  %5417 = vrcp.f32 %v3338_v63  ;;  %3681 = vperm.xlu0 %5170, %v5406_v43   ;;  %4984 = vmatpush3.bf16.msra.mxu1 %v5255_v16 }
 0x92d   : > { %v3337_v10 = vadd.f32 1.0, %v5408_v44  ;;  %v5256_v44 = vld [vmem:[%s6675_s13 + $0x28] sm:$0xff]  }
 0x92e   : > { %v5410_v37 = vpop.eup %5409  ;;  %4985 = vmatprep.subr.bf16.mxu1 %v5256_v44 }
 0x92f   : > { %3696 = vperm.xlu1 %5169, %v5410_v37   ;;  %5419 = vrcp.f32 %v3337_v10  ;;  %v5412_v8 = vpop.eup %5411 }
 0x930   : > { %v4965_v47 = vpop.f32.mrb[60].mxu1  ;;  %4986 = vmatpush3.bf16.msra.mxu1 %v5256_v44 }
 0x931   : > { %v4317_v7 = vmul.f32 -1.442695, %v4965_v47  ;;  %v3592_v40 = vpop.f32.mrb[61].mxu1  ;;  %v5257_v47 = vld [vmem:[%s6675_s13 + $0x30] sm:$0xff]  }
 0x932   : > { %v5414_v18 = vpop.eup %5413  ;;  %v4316_v33 = vmul.f32 -1.442695, %v3592_v40  ;;  %4987 = vmatprep.subr.bf16.mxu1 %v5257_v47 }
 0x933   : > { %5421 = vpow2.f32 %v4317_v7  ;;  %3691 = vperm.xlu1 %5169, %v5412_v8   ;;  %3706 = vperm.xlu0 %5170, %v5414_v18   ;;  %v5416_v11 = vpop.eup %5415  ;;  %v5258_v7 = vld [vmem:[%s6675_s13 + $0x38] sm:$0xff]  }
 0x934   : > { %5423 = vpow2.f32 %v4316_v33  ;;  %v4968_v55 = vpop.f32.mrb[62].mxu1  ;;  %4988 = vmatpush3.bf16.msra.mxu1 %v5257_v47 }
 0x935   : > { %v4319_v19 = vmul.f32 -1.442695, %v4968_v55  ;;  %v3602_v45 = vpop.f32.mrb[63].mxu1  ;;  %4989 = vmatprep.subr.bf16.mxu1 %v5258_v7 }
 0x936   : > { %v5418_v50 = vpop.eup %5417  ;;  %v4318_v2 = vmul.f32 -1.442695, %v3602_v45 }
 0x937   : > { %5425 = vpow2.f32 %v4319_v19  ;;  %3701 = vperm.xlu1 %5169, %v5416_v11   ;;  %3716 = vperm.xlu0 %5170, %v5418_v50  }
 0x938   : > { %v4971_v27 = vpop.f32.mrb[64].mxu1  ;;  %5427 = vpow2.f32 %v4318_v2  ;;  %4990 = vmatpush3.bf16.msra.mxu1 %v5258_v7 }
 0x939   : > { %v4321_v3 = vmul.f32 -1.442695, %v4971_v27  ;;  %v3612_v31 = vpop.f32.mrb[65].mxu1  ;;  %v5420_v52 = vpop.eup %5419 }
 0x93a   : > { %v4320_v0 = vmul.f32 -1.442695, %v3612_v31 }
 0x93b   : > { %5429 = vpow2.f32 %v4321_v3  ;;  %3711 = vperm.xlu1 %5169, %v5420_v52  }
 0x93c   : > { %v4974_v12 = vpop.f32.mrb[66].mxu1  ;;  %5431 = vpow2.f32 %v4320_v0 }
 0x93d   : > { %v5422_v24 = vpop.eup %5421  ;;  %v4323_v26 = vmul.f32 -1.442695, %v4974_v12  ;;  %v3622_v17 = vpop.f32.mrb[67].mxu1 }
 0x93e   : > { %v5424_v34 = vpop.eup %5423  ;;  %v3656_v6 = vadd.f32 1.0, %v5422_v24  ;;  %v4322_v36 = vmul.f32 -1.442695, %v3622_v17 }
 0x93f   : > { %5433 = vpow2.f32 %v4323_v26  ;;  %v3655_v39 = vadd.f32 1.0, %v5424_v34 }
 0x940   : > { %5435 = vrcp.f32 %v3656_v6 }
 0x941   : > { %v5426_v13 = vpop.eup %5425  ;;  %5437 = vpow2.f32 %v4322_v36 }
 0x942   : > { %v3658_v23 = vadd.f32 1.0, %v5426_v13  ;;  %v5428_v38 = vpop.eup %5427  ;;  %5439 = vrcp.f32 %v3655_v39 }
 0x943   : > { %v3657_v61 = vadd.f32 1.0, %v5428_v38 }
 0x944   : > { %5441 = vrcp.f32 %v3658_v23 }
 0x945   : > { %v5430_v51 = vpop.eup %5429 }
 0x946   : > { %v3660_v20 = vadd.f32 1.0, %v5430_v51  ;;  %v5432_v49 = vpop.eup %5431 }
 0x947   : > { %v3659_v4 = vadd.f32 1.0, %v5432_v49 }
 0x948   : > { %5443 = vrcp.f32 %v3660_v20 }
 0x949   : > { %v5434_v54 = vpop.eup %5433  ;;  %5445 = vrcp.f32 %v3657_v61 }
 0x94a   : > { %v5436_v62 = vpop.eup %5435  ;;  %v3662_v46 = vadd.f32 1.0, %v5434_v54 }
 0x94b   : > { %3734 = vperm.xlu1 %5169, %v5436_v62   ;;  %v5438_v59 = vpop.eup %5437 }
 0x94c   : > { %5447 = vrcp.f32 %v3662_v46  ;;  %v5440_v48 = vpop.eup %5439  ;;  %v3661_v63 = vadd.f32 1.0, %v5438_v59 }
 0x94d   : > { %5449 = vrcp.f32 %v3659_v4 }
 0x94e   : > { %v5442_v43 = vpop.eup %5441  ;;  %5451 = vrcp.f32 %v3661_v63 }
 0x94f   : > { %3729 = vperm.xlu1 %5169, %v5440_v48  }
 0x952   : > { %v5444_v10 = vpop.eup %5443 }
 0x953   : > { %3754 = vperm.xlu0 %5170, %v5444_v10   ;;  %3744 = vperm.xlu1 %5169, %v5442_v43   ;;  %v5446_v37 = vpop.eup %5445 }
 0x956   : > { %v5448_v8 = vpop.eup %5447 }
 0x957   : > { %3764 = vperm.xlu0 %5170, %v5448_v8   ;;  %3739 = vperm.xlu1 %5169, %v5446_v37   ;;  %v5450_v40 = vpop.eup %5449 }
 0x958   : > { %v5452_v18 = vpop.eup %5451 }
 0x95b   : > { %3749 = vperm.xlu1 %5169, %v5450_v40  }
 0x95f   : > { %3759 = vperm.xlu1 %5169, %v5452_v18  }
 0x9aa   : > { %v3687_v33 = vpop.permute.xlu1 %3686 }
 0x9ab   : > { %v3682_v45 = vpop.permute.xlu0 %3681  ;;  %v3720_v52 = vmul.f32 %v3687_v33, %v6346_v41 }
 0x9ac   : > { %v3719_v0 = vmul.f32 %v3682_v45, %v6350_v42 }
 0x9ae   : > { %v3697_v55 = vpop.permute.xlu1 %3696 }
 0x9af   : > { %v3722_v14 = vmul.f32 %v3697_v55, %v6356_v30 }
 0x9b2   : > { %v3692_v11 = vpop.permute.xlu1 %3691  ;;  %v3707_v2 = vpop.permute.xlu0 %3706 }
 0x9b3   : > { %v3724_v22 = vmul.f32 %v3707_v2, %v6366_v53 }
 0x9b6   : > { %v3702_v19 = vpop.permute.xlu1 %3701  ;;  %v3717_v21 = vpop.permute.xlu0 %3716 }
 0x9b7   : > { %v3723_v38 = vmul.f32 %v3702_v19, %v6370_v56 }
 0x9ba   : > { %v3712_v50 = vpop.permute.xlu1 %3711 }
 0x9bb   : > { %v3725_v61 = vmul.f32 %v3712_v50, %v6380_v1 }
 0x9ca   : > { %v3735_v27 = vpop.permute.xlu1 %3734 }
 0x9cb   : > { %v3768_v3 = vmul.f32 %v3735_v27, %v6402_v35  ;;  %v3721_v35 = vmul.f32 %v3692_v11, %v6360_v32 }
 0x9cd   : > { %v3776_v12 = vadd.f32 %v3768_v3, %v3720_v52 }
 0x9ce   : > { %v3730_v31 = vpop.permute.xlu1 %3729 }
 0x9cf   : > { %v3767_v57 = vmul.f32 %v3730_v31, %v6405_v25 }
 0x9d1   : > { %v3775_v24 = vadd.f32 %v3767_v57, %v3719_v0 }
 0x9d2   : > { %v3745_v26 = vpop.permute.xlu1 %3744  ;;  %v3755_v34 = vpop.permute.xlu0 %3754 }
 0x9d3   : > { %v3783_v17 = vpack.c.bf16 %v3776_v12, %v3775_v24  ;;  %v3770_v6 = vmul.f32 %v3745_v26, %v6412_v15  ;;  %v3772_v42 = vmul.f32 %v3755_v34, %v6422_v28  ;;  %v3726_v28 = vmul.f32 %v3717_v21, %v6376_v60 }
 0x9d5   : > { %4991 = vmatprep.mubr.bf16.mxu1 %v3783_v17  ;;  %v3778_v39 = vadd.f32 %v3770_v6, %v3722_v14  ;;  %v3780_v20 = vadd.f32 %v3772_v42, %v3724_v22 }
 0x9d6   : > { %v3740_v36 = vpop.permute.xlu1 %3739  ;;  %v3765_v13 = vpop.permute.xlu0 %3764 }
 0x9d7   : > { %v3769_v41 = vmul.f32 %v3740_v36, %v6415_v5  ;;  %v3774_v30 = vmul.f32 %v3765_v13, %v6430_v58 }
 0x9d9   : > { %v3777_v25 = vadd.f32 %v3769_v41, %v3721_v35  ;;  %v3782_v53 = vadd.f32 %v3774_v30, %v3726_v28 }
 0x9da   : > { %v3750_v23 = vpop.permute.xlu1 %3749 }
 0x9db   : > { %v3784_v51 = vpack.c.bf16 %v3778_v39, %v3777_v25  ;;  %v3771_v15 = vmul.f32 %v3750_v23, %v6425_v9 }
 0x9dd   : > { %v3779_v32 = vadd.f32 %v3771_v15, %v3723_v38  ;;  %4992 = vmatmul.mubr.bf16.vlgmr.msra.gmra.mrb[68].mxu1 %v3784_v51 }
 0x9de   : > { %v3760_v5 = vpop.permute.xlu1 %3759 }
 0x9df   : > { %v3773_v49 = vmul.f32 %v3760_v5, %v6433_v29  ;;  %v3785_v54 = vpack.c.bf16 %v3780_v20, %v3779_v32 }
 0x9e1   : > { %v3781_v62 = vadd.f32 %v3773_v49, %v3725_v61  ;;  %4995 = vmatprep.mubr.bf16.mxu1 %v3785_v54 }
 0x9e3   : > { %v3786_v56 = vpack.c.bf16 %v3782_v53, %v3781_v62 }
 0x9e5   : > { %4996 = vmatmul.mubr.bf16.gmra.mrb[72].mxu1 %v3786_v56 }
 0xab0   : > { %v4993_v9 = vpop.f32.mrb[68].mxu1 }
 0xab1   : > { %3918 = vst [vmem:[%s484_s26 + $0x10] sm:$0xff] %v4993_v9  ;;  %v3885_v58 = vpop.f32.mrb[69].mxu1 }
 0xab2   : > { %3916 = vst [vmem:[%s484_s26] sm:$0xff] %v3885_v58  ;;  %v4994_v60 = vpop.f32.mrb[70].mxu1 }
 0xab3   : > { %3919 = vst [vmem:[%s484_s26 + $0x18] sm:$0xff] %v4994_v60  ;;  %v3888_v1 = vpop.f32.mrb[71].mxu1 }
 0xab4   : > { %3917 = vst [vmem:[%s484_s26 + $0x8] sm:$0xff] %v3888_v1 }
 0xab8   : > { %v4997_v29 = vpop.f32.mrb[72].mxu1 }
 0xab9   : > { %3922 = vst [vmem:[%s484_s26 + $0x30] sm:$0xff] %v4997_v29  ;;  %v3901_v46 = vpop.f32.mrb[73].mxu1 }
 0xaba   : > { %3920 = vst [vmem:[%s484_s26 + $0x20] sm:$0xff] %v3901_v46  ;;  %v4998_v4 = vpop.f32.mrb[74].mxu1 }
 0xabb   : > { %3923 = vst [vmem:[%s484_s26 + $0x38] sm:$0xff] %v4998_v4  ;;  %v3904_v59 = vpop.f32.mrb[75].mxu1 }
 0xabc   : > { %3921 = vst [vmem:[%s484_s26 + $0x28] sm:$0xff] %v3904_v59 }
 0xabd PF: > { %s24_s29 = sadd.s32 1, %s5459_s29  }
 0xabe   : > { %p21_p4 = scmp.ge.s32.totalorder %s24_s29, 4  }
 0xac0   :  { %23 = sbr.rel (!%p21_p4) target bundleno = 1 (0x1), region = 122 }

</bundles_post_ra>
